<compile_context>
chip_gen: v5e
topology: v5e:2x2
jax: 0.10.0
libtpu: 0.0.40
codegen_flags: <defaults>
</compile_context>

<pallas_src>
import math

import jax
import jax.numpy as jnp
from jax import lax
from jax.experimental import pallas as pl
from jax.experimental.pallas import tpu as pltpu

# ---------------- small synthetic configuration ----------------
B = 2              # batch
S = 8              # short-text sequence length
C = 8              # concepts per example
E = 32             # embedding_dimension
HID = 32           # hidden_dimension (per LSTM direction)
DA = HID           # da
DB = HID // 2      # db
DAB = DA + DB
OUT = 4            # output_dimension
TRAIN_VOCAB = 50
CONCEPT_VOCAB = 40
GAMMA = 0.5


def _sigmoid(x):
    # tanh-based logistic: no exp(-x) overflow for large |x|
    return 0.5 * (jnp.tanh(0.5 * x) + 1.0)


def _softmax_col(x):
    # softmax over axis 0 (the concept axis); works column-wise for (C, k)
    m = jnp.max(x, axis=0, keepdims=True)
    e = jnp.exp(x - m)
    return e / jnp.sum(e, axis=0, keepdims=True)


def _shift_stack(xm, length):
    """[prev | cur | next] along lanes, with zero boundary rows along axis 0.

    Implements the 3 taps of a k=3 / pad=1 conv over the concept axis as one
    lane-concatenated operand, so the conv becomes a single matmul.
    """
    rows = lax.broadcasted_iota(jnp.int32, xm.shape, 0)
    prev = jnp.where(rows > 0, pltpu.roll(xm, shift=1, axis=0), 0.0)
    nxt = jnp.where(rows < length - 1,
                    pltpu.roll(xm, shift=length - 1, axis=0), 0.0)
    return jnp.concatenate([prev, xm, nxt], axis=-1)


# --------------------------- fused kernel ---------------------------
def stcka_kernel(x_ref, c_ref, wih_ref, whh_ref, blstm_ref,
                 Wab_ref, Wq_ref, Wsm_ref, outW_ref, bias_ref,
                 o_ref, xp_s, h_s):
    # ---- stage 1: bidirectional LSTM (merged directions) ----
    x = x_ref[0]                                                   # (S, 2E) = [x | rev(x)]
    xp_s[...] = (jnp.dot(x, wih_ref[...],
                         preferred_element_type=jnp.float32)
                 + blstm_ref[...])                                 # (S, 8H), interleaved gates
    whh = whh_ref[...]                                             # (2H, 8H) block-diagonal

    def step(t, carry):
        h_cat, c_cat = carry                                       # (1, 2H): [h_f | h_b]
        gates = xp_s[pl.ds(t, 1), :] + jnp.dot(
            h_cat, whh, preferred_element_type=jnp.float32)        # (1, 8H)
        sig = _sigmoid(gates)
        tnh = jnp.tanh(gates)
        i_g = sig[:, 0:2 * HID]
        f_g = sig[:, 2 * HID:4 * HID]
        g_g = tnh[:, 4 * HID:6 * HID]
        o_g = sig[:, 6 * HID:8 * HID]
        c_new = f_g * c_cat + i_g * g_g
        h_new = o_g * jnp.tanh(c_new)
        # forward hidden state at time t, backward hidden state at time S-1-t
        h_s[pl.ds(t, 1), pl.ds(0, HID)] = h_new[:, 0:HID]
        h_s[pl.ds(S - 1 - t, 1), pl.ds(HID, HID)] = h_new[:, HID:2 * HID]
        return h_new, c_new

    zero2 = jnp.zeros((1, 2 * HID), jnp.float32)
    lax.fori_loop(0, S, step, (zero2, zero2), unroll=True)

    # ---- stage 2: self-attention + max-pool -> q ----
    Hm = h_s[...]                                                  # (S, 2H)
    scores = lax.dot_general(Hm, Hm, (((1,), (1,)), ((), ())),
                             preferred_element_type=jnp.float32)   # (S, S)
    scores = scores * (1.0 / math.sqrt(2.0 * HID))                 # sqrt(2u), u = HID
    m = jnp.max(scores, axis=-1, keepdims=True)
    e = jnp.exp(scores - m)
    attn_p = e / jnp.sum(e, axis=-1, keepdims=True)
    attn = jnp.dot(attn_p, Hm, preferred_element_type=jnp.float32)  # (S, 2H)
    q = jnp.max(attn, axis=0, keepdims=True)                        # (1, 2H)

    # ---- stage 3: concept attentions + output ----
    c = c_ref[0]                                                   # (C, E)
    bias_ab = bias_ref[:, 0:DAB]                                   # [aW1_b | bW2_b]
    bias_sm = bias_ref[:, DAB:DAB + 2]                             # [aw1_b, bw2_b]
    out_b = bias_ref[:, DAB + 2:DAB + 2 + OUT]                     # out_b

    c_stack = _shift_stack(c, C)                                   # (C, 3E)

    # q contribution to the cst conv (replaces broadcast+concat of q into cq):
    # all rows see q@(tap0+tap1+tap2); row 0 loses tap0, row C-1 loses tap2.
    qW = jnp.dot(q, Wq_ref[...], preferred_element_type=jnp.float32)   # (1, 3*DAB)
    q_base = qW[:, 0:DAB]
    q_c0 = qW[:, DAB:2 * DAB]
    q_cL = qW[:, 2 * DAB:3 * DAB]
    rows = lax.broadcasted_iota(jnp.int32, (C, DAB), 0)
    q_contrib = (q_base
                 - jnp.where(rows == 0, q_c0, 0.0)
                 - jnp.where(rows == C - 1, q_cL, 0.0))            # (C, DAB); beta cols are 0

    ab_h = jnp.tanh(jnp.dot(c_stack, Wab_ref[...],
                            preferred_element_type=jnp.float32)
                    + bias_ab + q_contrib)                         # (C, DA+DB) = [alpha_h|beta_h]
    ab_stack = _shift_stack(ab_h, C)                               # (C, 3*DAB)
    logits = jnp.dot(ab_stack, Wsm_ref[...],
                     preferred_element_type=jnp.float32) + bias_sm  # (C, 2) = [alpha|beta]

    sm = _softmax_col(logits)                                      # column-wise softmax
    comb = GAMMA * sm[:, 0:1] + (1.0 - GAMMA) * sm[:, 1:2]         # (C, 1)
    a_i = _softmax_col(comb)                                       # (C, 1)

    p_vec = jnp.sum(a_i * c, axis=0, keepdims=True)                # (1, E)
    final = jnp.concatenate([q, p_vec], axis=-1)                   # (1, 2H+E)
    o_ref[0] = (jnp.dot(final, outW_ref[...],
                        preferred_element_type=jnp.float32) + out_b)


# ---------------------- glue: weight re-layouts ----------------------
def _bidir_block(wf_T, wb_T):
    """[fwd rows | bwd rows] -> interleaved gate cols [i_f,i_b,f_f,f_b,g_f,g_b,o_f,o_b]."""
    h = HID
    zf = jnp.zeros((wf_T.shape[0], h), jnp.float32)
    zb = jnp.zeros((wb_T.shape[0], h), jnp.float32)
    top = jnp.concatenate([wf_T[:, 0:h], zf, wf_T[:, h:2 * h], zf,
                           wf_T[:, 2 * h:3 * h], zf, wf_T[:, 3 * h:4 * h], zf], axis=1)
    bot = jnp.concatenate([zb, wb_T[:, 0:h], zb, wb_T[:, h:2 * h],
                           zb, wb_T[:, 2 * h:3 * h], zb, wb_T[:, 3 * h:4 * h]], axis=1)
    return jnp.concatenate([top, bot], axis=0)


def _bidir_bias(bf, bb):
    h = HID
    return jnp.concatenate([bf[0:h], bb[0:h], bf[h:2 * h], bb[h:2 * h],
                            bf[2 * h:3 * h], bb[2 * h:3 * h],
                            bf[3 * h:4 * h], bb[3 * h:4 * h]]).reshape(1, 8 * h)


# ------------------------- parameters (synthetic) -------------------------
def init_params(key):
    ks = jax.random.split(key, 18)

    def rn(k, shape, scale=0.1):
        return jax.random.normal(k, shape, jnp.float32) * scale

    p = {}
    p["train_emb"] = rn(ks[0], (TRAIN_VOCAB, E), 0.5)
    p["concept_emb"] = rn(ks[1], (CONCEPT_VOCAB, E), 0.5)
    # bidirectional LSTM, PyTorch layout: weight_ih (4H, E), weight_hh (4H, H)
    p["wih_f"] = rn(ks[2], (4 * HID, E))
    p["whh_f"] = rn(ks[3], (4 * HID, HID))
    p["b_f"] = rn(ks[4], (4 * HID,))          # b_ih + b_hh folded together
    p["wih_b"] = rn(ks[5], (4 * HID, E))
    p["whh_b"] = rn(ks[6], (4 * HID, HID))
    p["b_b"] = rn(ks[7], (4 * HID,))
    # Conv1d weights, PyTorch layout (C_out, C_in, K=3)
    p["aW1_w"] = rn(ks[8], (DA, 2 * HID + E, 3))
    p["aW1_b"] = rn(ks[9], (DA,))
    p["aw1_w"] = rn(ks[10], (1, DA, 3))
    p["aw1_b"] = rn(ks[11], (1,))
    p["bW2_w"] = rn(ks[12], (DB, E, 3))
    p["bW2_b"] = rn(ks[13], (DB,))
    p["bw2_w"] = rn(ks[14], (1, DB, 3))
    p["bw2_b"] = rn(ks[15], (1,))
    p["out_w"] = rn(ks[16], (OUT, 2 * HID + E, 3))
    p["out_b"] = rn(ks[17], (OUT,))
    return p


# ------------------------------ forward ------------------------------
def stcka_forward(params, short_text, concepts):
    # glue: embedding lookups + parameter re-layouts (plain JAX outside the kernel)
    x_emb = jnp.take(params["train_emb"], short_text, axis=0)      # (B, S, E)
    c_emb = jnp.take(params["concept_emb"], concepts, axis=0)      # (B, C, E)
    # the backward direction consumes a time-reversed copy so both directions
    # share one input-projection matmul and one loop index
    x_cat = jnp.concatenate([x_emb, x_emb[:, ::-1, :]], axis=-1)   # (B, S, 2E)

    W_ih = _bidir_block(params["wih_f"].T, params["wih_b"].T)      # (2E, 8H)
    W_hh = _bidir_block(params["whh_f"].T, params["whh_b"].T)      # (2H, 8H) block-diagonal
    b_lstm = _bidir_bias(params["b_f"], params["b_b"])             # (1, 8H)

    # conv weights: per-tap (Cin, Cout) matrices, taps stacked along rows so a
    # k=3/pad=1 conv is one matmul against a [prev|cur|next] stacked operand.
    def tap_T(w, k):                                               # (Cout,Cin,3) -> (Cin,Cout)
        return w[:, :, k].T

    aT = [tap_T(params["aW1_w"], k) for k in range(3)]             # (E+2H, DA)
    bT = [tap_T(params["bW2_w"], k) for k in range(3)]             # (E, DB)
    aC = [t[0:E] for t in aT]                                      # concept-input columns
    aQ = [t[E:E + 2 * HID] for t in aT]                            # q-input columns

    W_ab = jnp.concatenate(
        [jnp.concatenate([aC[k], bT[k]], axis=1) for k in range(3)], axis=0)  # (3E, DAB)

    zq = jnp.zeros((2 * HID, DB), jnp.float32)
    Wq_pack = jnp.concatenate(                                     # (2H, 3*DAB)
        [jnp.concatenate([aQ[0] + aQ[1] + aQ[2], zq], axis=1),     # base (all taps)
         jnp.concatenate([aQ[0], zq], axis=1),                     # correction at row 0
         jnp.concatenate([aQ[2], zq], axis=1)], axis=1)            # correction at row C-1

    a2 = [tap_T(params["aw1_w"], k) for k in range(3)]             # (DA, 1)
    b2 = [tap_T(params["bw2_w"], k) for k in range(3)]             # (DB, 1)
    zA = jnp.zeros((DA, 1), jnp.float32)
    zB = jnp.zeros((DB, 1), jnp.float32)
    W_small = jnp.concatenate(                                     # (3*DAB, 2)
        [jnp.concatenate([jnp.concatenate([a2[k], zA], axis=1),
                          jnp.concatenate([zB, b2[k]], axis=1)], axis=0)
         for k in range(3)], axis=0)

    # output Conv1d on a length-1 input with padding=1: only the centre tap is real
    outW = params["out_w"][:, :, 1].T                              # (2H+E, OUT)
    bias_misc = jnp.concatenate(
        [params["aW1_b"], params["bW2_b"], params["aw1_b"],
         params["bw2_b"], params["out_b"]]).reshape(1, DAB + 2 + OUT)

    def rep_spec(arr):                                             # replicated full-array block
        return pl.BlockSpec(arr.shape, lambda b, nd=arr.ndim: (0,) * nd)

    out = pl.pallas_call(
        stcka_kernel,
        out_shape=jax.ShapeDtypeStruct((B, 1, OUT), jnp.float32),
        grid_spec=pltpu.PrefetchScalarGridSpec(
            num_scalar_prefetch=0,
            grid=(B,),
            in_specs=[
                pl.BlockSpec((1, S, 2 * E), lambda b: (b, 0, 0)),
                pl.BlockSpec((1, C, E), lambda b: (b, 0, 0)),
                rep_spec(W_ih),
                rep_spec(W_hh),
                rep_spec(b_lstm),
                rep_spec(W_ab),
                rep_spec(Wq_pack),
                rep_spec(W_small),
                rep_spec(outW),
                rep_spec(bias_misc),
            ],
            out_specs=pl.BlockSpec((1, 1, OUT), lambda b: (b, 0, 0)),
            scratch_shapes=[
                pltpu.VMEM((S, 8 * HID), jnp.float32),   # merged gate pre-activations
                pltpu.VMEM((S, 2 * HID), jnp.float32),   # bidirectional hidden states
            ],
        ),
        compiler_params=pltpu.CompilerParams(
            dimension_semantics=("parallel",)),   # v7x: one batch program per TensorCore
    )(x_cat, c_emb, W_ih, W_hh, b_lstm, W_ab, Wq_pack, W_small, outW, bias_misc)

    # matches torch `output.squeeze()` for B > 1, OUT > 1
    return out.reshape(B, OUT)


if __name__ == "__main__":
    key = jax.random.PRNGKey(0)
    pkey, ikey1, ikey2 = jax.random.split(key, 3)
    params = init_params(pkey)
    short_text = jax.random.randint(ikey1, (B, S), 0, TRAIN_VOCAB, dtype=jnp.int32)
    concepts = jax.random.randint(ikey2, (B, C), 0, CONCEPT_VOCAB, dtype=jnp.int32)

    out = jax.jit(stcka_forward)(params, short_text, concepts)
    jax.block_until_ready(out)
    assert out.shape == (B, OUT)
    assert bool(jnp.all(jnp.isfinite(out)))
    print("KERNEL_OK")
</pallas_src>

<mosaic_0001>
module attributes {stable_mosaic.version = 11 : i64} {
  func.func @stcka_kernel(%arg0: i32, %arg1: memref<1x8x64xf32, #tpu.memory_space<vmem>>, %arg2: memref<1x8x32xf32, #tpu.memory_space<vmem>>, %arg3: memref<64x256xf32, #tpu.memory_space<vmem>>, %arg4: memref<64x256xf32, #tpu.memory_space<vmem>>, %arg5: memref<1x256xf32, #tpu.memory_space<vmem>>, %arg6: memref<96x48xf32, #tpu.memory_space<vmem>>, %arg7: memref<64x144xf32, #tpu.memory_space<vmem>>, %arg8: memref<144x2xf32, #tpu.memory_space<vmem>>, %arg9: memref<96x4xf32, #tpu.memory_space<vmem>>, %arg10: memref<1x54xf32, #tpu.memory_space<vmem>>, %arg11: memref<1x1x4xf32, #tpu.memory_space<vmem>>, %arg12: memref<8x256xf32, #tpu.memory_space<vmem>>, %arg13: memref<8x64xf32, #tpu.memory_space<vmem>>) attributes {dimension_semantics = [#tpu.dimension_semantics<parallel>], iteration_bounds = array<i64: 2>, scalar_prefetch = 0 : i64, scratch_operands = 2 : i64, tpu.core_type = #tpu.core_type<tc>, window_params = [{transform_indices = @transform_0, window_bounds = array<i64: 1, 8, 64>}, {transform_indices = @transform_1, window_bounds = array<i64: 1, 8, 32>}, {pipeline_mode = #tpu.pipeline_mode<synchronous>, transform_indices = @transform_2, window_bounds = array<i64: 64, 256>}, {pipeline_mode = #tpu.pipeline_mode<synchronous>, transform_indices = @transform_3, window_bounds = array<i64: 64, 256>}, {pipeline_mode = #tpu.pipeline_mode<synchronous>, transform_indices = @transform_4, window_bounds = array<i64: 1, 256>}, {pipeline_mode = #tpu.pipeline_mode<synchronous>, transform_indices = @transform_5, window_bounds = array<i64: 96, 48>}, {pipeline_mode = #tpu.pipeline_mode<synchronous>, transform_indices = @transform_6, window_bounds = array<i64: 64, 144>}, {pipeline_mode = #tpu.pipeline_mode<synchronous>, transform_indices = @transform_7, window_bounds = array<i64: 144, 2>}, {pipeline_mode = #tpu.pipeline_mode<synchronous>, transform_indices = @transform_8, window_bounds = array<i64: 96, 4>}, {pipeline_mode = #tpu.pipeline_mode<synchronous>, transform_indices = @transform_9, window_bounds = array<i64: 1, 54>}, {transform_indices = @transform_10, window_bounds = array<i64: 1, 1, 4>}]} {
    %c0 = arith.constant 0 : index
    %c0_0 = arith.constant 0 : index
    %c0_1 = arith.constant 0 : index
    %0 = vector.load %arg1[%c0, %c0_0, %c0_1] : memref<1x8x64xf32, #tpu.memory_space<vmem>>, vector<1x8x64xf32>
    %1 = vector.shape_cast %0 : vector<1x8x64xf32> to vector<8x64xf32>
    %c0_2 = arith.constant 0 : index
    %c0_3 = arith.constant 0 : index
    %2 = vector.load %arg3[%c0_2, %c0_3] : memref<64x256xf32, #tpu.memory_space<vmem>>, vector<64x256xf32>
    %cst = arith.constant dense<0.000000e+00> : vector<8x256xf32>
    %3 = tpu.matmul %1, %2, %cst {dimension_numbers = #tpu.dot_dimension_numbers<[1], [0], [0], [1], [0, 0, 1, 1], [], []>} : vector<8x64xf32>, vector<64x256xf32>, vector<8x256xf32> -> vector<8x256xf32>
    %c0_4 = arith.constant 0 : index
    %c0_5 = arith.constant 0 : index
    %4 = vector.load %arg5[%c0_4, %c0_5] : memref<1x256xf32, #tpu.memory_space<vmem>>, vector<1x256xf32>
    %5 = vector.broadcast %4 : vector<1x256xf32> to vector<8x256xf32>
    %6 = arith.addf %3, %5 : vector<8x256xf32>
    %c0_6 = arith.constant 0 : index
    %c0_7 = arith.constant 0 : index
    %7 = vector.load %arg12[%c0_6, %c0_7] : memref<8x256xf32, #tpu.memory_space<vmem>>, vector<8x256xf32>
    tpu.vector_store %arg12[%c0_6, %c0_7], %6 {strides = array<i32>} : memref<8x256xf32, #tpu.memory_space<vmem>>, vector<8x256xf32>,
    %c0_8 = arith.constant 0 : index
    %c0_9 = arith.constant 0 : index
    %8 = vector.load %arg4[%c0_8, %c0_9] : memref<64x256xf32, #tpu.memory_space<vmem>>, vector<64x256xf32>
    %cst_10 = arith.constant 0.000000e+00 : f32
    %9 = vector.broadcast %cst_10 : f32 to vector<1x64xf32>
    %c0_i32 = arith.constant 0 : i32
    %10 = arith.index_cast %c0_i32 : i32 to index
    %c0_11 = arith.constant 0 : index
    %11 = vector.load %arg12[%10, %c0_11] : memref<8x256xf32, #tpu.memory_space<vmem>>, vector<1x256xf32>
    %cst_12 = arith.constant dense<0.000000e+00> : vector<1x256xf32>
    %12 = tpu.matmul %9, %8, %cst_12 {dimension_numbers = #tpu.dot_dimension_numbers<[1], [0], [0], [1], [0, 0, 1, 1], [], []>} : vector<1x64xf32>, vector<64x256xf32>, vector<1x256xf32> -> vector<1x256xf32>
    %13 = arith.addf %11, %12 : vector<1x256xf32>
    %cst_13 = arith.constant 5.000000e-01 : f32
    %14 = vector.broadcast %cst_13 : f32 to vector<1x256xf32>
    %15 = arith.mulf %14, %13 : vector<1x256xf32>
    %16 = math.tanh %15 : vector<1x256xf32>
    %cst_14 = arith.constant 1.000000e+00 : f32
    %17 = vector.broadcast %cst_14 : f32 to vector<1x256xf32>
    %18 = arith.addf %16, %17 : vector<1x256xf32>
    %cst_15 = arith.constant 5.000000e-01 : f32
    %19 = vector.broadcast %cst_15 : f32 to vector<1x256xf32>
    %20 = arith.mulf %19, %18 : vector<1x256xf32>
    %21 = math.tanh %13 : vector<1x256xf32>
    %22 = vector.extract_strided_slice %20 {offsets = [0, 0], sizes = [1, 64], strides = [1, 1]} : vector<1x256xf32> to vector<1x64xf32>
    %23 = vector.extract_strided_slice %20 {offsets = [0, 64], sizes = [1, 64], strides = [1, 1]} : vector<1x256xf32> to vector<1x64xf32>
    %24 = vector.extract_strided_slice %21 {offsets = [0, 128], sizes = [1, 64], strides = [1, 1]} : vector<1x256xf32> to vector<1x64xf32>
    %25 = vector.extract_strided_slice %20 {offsets = [0, 192], sizes = [1, 64], strides = [1, 1]} : vector<1x256xf32> to vector<1x64xf32>
    %26 = arith.mulf %23, %9 : vector<1x64xf32>
    %27 = arith.mulf %22, %24 : vector<1x64xf32>
    %28 = arith.addf %26, %27 : vector<1x64xf32>
    %29 = math.tanh %28 : vector<1x64xf32>
    %30 = arith.mulf %25, %29 : vector<1x64xf32>
    %31 = vector.extract_strided_slice %30 {offsets = [0, 0], sizes = [1, 32], strides = [1, 1]} : vector<1x64xf32> to vector<1x32xf32>
    %32 = arith.index_cast %c0_i32 : i32 to index
    %c0_16 = arith.constant 0 : index
    %33 = vector.load %arg13[%32, %c0_16] : memref<8x64xf32, #tpu.memory_space<vmem>>, vector<1x32xf32>
    tpu.vector_store %arg13[%32, %c0_16], %31 {strides = array<i32>} : memref<8x64xf32, #tpu.memory_space<vmem>>, vector<1x32xf32>,
    %34 = vector.extract_strided_slice %30 {offsets = [0, 32], sizes = [1, 32], strides = [1, 1]} : vector<1x64xf32> to vector<1x32xf32>
    %c7_i32 = arith.constant 7 : i32
    %35 = arith.subi %c7_i32, %c0_i32 : i32
    %36 = arith.index_cast %35 : i32 to index
    %c32 = arith.constant 32 : index
    %37 = vector.load %arg13[%36, %c32] : memref<8x64xf32, #tpu.memory_space<vmem>>, vector<1x32xf32>
    tpu.vector_store %arg13[%36, %c32], %34 {strides = array<i32>} : memref<8x64xf32, #tpu.memory_space<vmem>>, vector<1x32xf32>,
    %c1_i32 = arith.constant 1 : i32
    %38 = arith.index_cast %c1_i32 : i32 to index
    %c0_17 = arith.constant 0 : index
    %39 = vector.load %arg12[%38, %c0_17] : memref<8x256xf32, #tpu.memory_space<vmem>>, vector<1x256xf32>
    %cst_18 = arith.constant dense<0.000000e+00> : vector<1x256xf32>
    %40 = tpu.matmul %30, %8, %cst_18 {dimension_numbers = #tpu.dot_dimension_numbers<[1], [0], [0], [1], [0, 0, 1, 1], [], []>} : vector<1x64xf32>, vector<64x256xf32>, vector<1x256xf32> -> vector<1x256xf32>
    %41 = arith.addf %39, %40 : vector<1x256xf32>
    %cst_19 = arith.constant 5.000000e-01 : f32
    %42 = vector.broadcast %cst_19 : f32 to vector<1x256xf32>
    %43 = arith.mulf %42, %41 : vector<1x256xf32>
    %44 = math.tanh %43 : vector<1x256xf32>
    %cst_20 = arith.constant 1.000000e+00 : f32
    %45 = vector.broadcast %cst_20 : f32 to vector<1x256xf32>
    %46 = arith.addf %44, %45 : vector<1x256xf32>
    %cst_21 = arith.constant 5.000000e-01 : f32
    %47 = vector.broadcast %cst_21 : f32 to vector<1x256xf32>
    %48 = arith.mulf %47, %46 : vector<1x256xf32>
    %49 = math.tanh %41 : vector<1x256xf32>
    %50 = vector.extract_strided_slice %48 {offsets = [0, 0], sizes = [1, 64], strides = [1, 1]} : vector<1x256xf32> to vector<1x64xf32>
    %51 = vector.extract_strided_slice %48 {offsets = [0, 64], sizes = [1, 64], strides = [1, 1]} : vector<1x256xf32> to vector<1x64xf32>
    %52 = vector.extract_strided_slice %49 {offsets = [0, 128], sizes = [1, 64], strides = [1, 1]} : vector<1x256xf32> to vector<1x64xf32>
    %53 = vector.extract_strided_slice %48 {offsets = [0, 192], sizes = [1, 64], strides = [1, 1]} : vector<1x256xf32> to vector<1x64xf32>
    %54 = arith.mulf %51, %28 : vector<1x64xf32>
    %55 = arith.mulf %50, %52 : vector<1x64xf32>
    %56 = arith.addf %54, %55 : vector<1x64xf32>
    %57 = math.tanh %56 : vector<1x64xf32>
    %58 = arith.mulf %53, %57 : vector<1x64xf32>
    %59 = vector.extract_strided_slice %58 {offsets = [0, 0], sizes = [1, 32], strides = [1, 1]} : vector<1x64xf32> to vector<1x32xf32>
    %60 = arith.index_cast %c1_i32 : i32 to index
    %c0_22 = arith.constant 0 : index
    %61 = vector.load %arg13[%60, %c0_22] : memref<8x64xf32, #tpu.memory_space<vmem>>, vector<1x32xf32>
    tpu.vector_store %arg13[%60, %c0_22], %59 {strides = array<i32>} : memref<8x64xf32, #tpu.memory_space<vmem>>, vector<1x32xf32>,
    %62 = vector.extract_strided_slice %58 {offsets = [0, 32], sizes = [1, 32], strides = [1, 1]} : vector<1x64xf32> to vector<1x32xf32>
    %c7_i32_23 = arith.constant 7 : i32
    %63 = arith.subi %c7_i32_23, %c1_i32 : i32
    %64 = arith.index_cast %63 : i32 to index
    %c32_24 = arith.constant 32 : index
    %65 = vector.load %arg13[%64, %c32_24] : memref<8x64xf32, #tpu.memory_space<vmem>>, vector<1x32xf32>
    tpu.vector_store %arg13[%64, %c32_24], %62 {strides = array<i32>} : memref<8x64xf32, #tpu.memory_space<vmem>>, vector<1x32xf32>,
    %c2_i32 = arith.constant 2 : i32
    %66 = arith.index_cast %c2_i32 : i32 to index
    %c0_25 = arith.constant 0 : index
    %67 = vector.load %arg12[%66, %c0_25] : memref<8x256xf32, #tpu.memory_space<vmem>>, vector<1x256xf32>
    %cst_26 = arith.constant dense<0.000000e+00> : vector<1x256xf32>
    %68 = tpu.matmul %58, %8, %cst_26 {dimension_numbers = #tpu.dot_dimension_numbers<[1], [0], [0], [1], [0, 0, 1, 1], [], []>} : vector<1x64xf32>, vector<64x256xf32>, vector<1x256xf32> -> vector<1x256xf32>
    %69 = arith.addf %67, %68 : vector<1x256xf32>
    %cst_27 = arith.constant 5.000000e-01 : f32
    %70 = vector.broadcast %cst_27 : f32 to vector<1x256xf32>
    %71 = arith.mulf %70, %69 : vector<1x256xf32>
    %72 = math.tanh %71 : vector<1x256xf32>
    %cst_28 = arith.constant 1.000000e+00 : f32
    %73 = vector.broadcast %cst_28 : f32 to vector<1x256xf32>
    %74 = arith.addf %72, %73 : vector<1x256xf32>
    %cst_29 = arith.constant 5.000000e-01 : f32
    %75 = vector.broadcast %cst_29 : f32 to vector<1x256xf32>
    %76 = arith.mulf %75, %74 : vector<1x256xf32>
    %77 = math.tanh %69 : vector<1x256xf32>
    %78 = vector.extract_strided_slice %76 {offsets = [0, 0], sizes = [1, 64], strides = [1, 1]} : vector<1x256xf32> to vector<1x64xf32>
    %79 = vector.extract_strided_slice %76 {offsets = [0, 64], sizes = [1, 64], strides = [1, 1]} : vector<1x256xf32> to vector<1x64xf32>
    %80 = vector.extract_strided_slice %77 {offsets = [0, 128], sizes = [1, 64], strides = [1, 1]} : vector<1x256xf32> to vector<1x64xf32>
    %81 = vector.extract_strided_slice %76 {offsets = [0, 192], sizes = [1, 64], strides = [1, 1]} : vector<1x256xf32> to vector<1x64xf32>
    %82 = arith.mulf %79, %56 : vector<1x64xf32>
    %83 = arith.mulf %78, %80 : vector<1x64xf32>
    %84 = arith.addf %82, %83 : vector<1x64xf32>
    %85 = math.tanh %84 : vector<1x64xf32>
    %86 = arith.mulf %81, %85 : vector<1x64xf32>
    %87 = vector.extract_strided_slice %86 {offsets = [0, 0], sizes = [1, 32], strides = [1, 1]} : vector<1x64xf32> to vector<1x32xf32>
    %88 = arith.index_cast %c2_i32 : i32 to index
    %c0_30 = arith.constant 0 : index
    %89 = vector.load %arg13[%88, %c0_30] : memref<8x64xf32, #tpu.memory_space<vmem>>, vector<1x32xf32>
    tpu.vector_store %arg13[%88, %c0_30], %87 {strides = array<i32>} : memref<8x64xf32, #tpu.memory_space<vmem>>, vector<1x32xf32>,
    %90 = vector.extract_strided_slice %86 {offsets = [0, 32], sizes = [1, 32], strides = [1, 1]} : vector<1x64xf32> to vector<1x32xf32>
    %c7_i32_31 = arith.constant 7 : i32
    %91 = arith.subi %c7_i32_31, %c2_i32 : i32
    %92 = arith.index_cast %91 : i32 to index
    %c32_32 = arith.constant 32 : index
    %93 = vector.load %arg13[%92, %c32_32] : memref<8x64xf32, #tpu.memory_space<vmem>>, vector<1x32xf32>
    tpu.vector_store %arg13[%92, %c32_32], %90 {strides = array<i32>} : memref<8x64xf32, #tpu.memory_space<vmem>>, vector<1x32xf32>,
    %c3_i32 = arith.constant 3 : i32
    %94 = arith.index_cast %c3_i32 : i32 to index
    %c0_33 = arith.constant 0 : index
    %95 = vector.load %arg12[%94, %c0_33] : memref<8x256xf32, #tpu.memory_space<vmem>>, vector<1x256xf32>
    %cst_34 = arith.constant dense<0.000000e+00> : vector<1x256xf32>
    %96 = tpu.matmul %86, %8, %cst_34 {dimension_numbers = #tpu.dot_dimension_numbers<[1], [0], [0], [1], [0, 0, 1, 1], [], []>} : vector<1x64xf32>, vector<64x256xf32>, vector<1x256xf32> -> vector<1x256xf32>
    %97 = arith.addf %95, %96 : vector<1x256xf32>
    %cst_35 = arith.constant 5.000000e-01 : f32
    %98 = vector.broadcast %cst_35 : f32 to vector<1x256xf32>
    %99 = arith.mulf %98, %97 : vector<1x256xf32>
    %100 = math.tanh %99 : vector<1x256xf32>
    %cst_36 = arith.constant 1.000000e+00 : f32
    %101 = vector.broadcast %cst_36 : f32 to vector<1x256xf32>
    %102 = arith.addf %100, %101 : vector<1x256xf32>
    %cst_37 = arith.constant 5.000000e-01 : f32
    %103 = vector.broadcast %cst_37 : f32 to vector<1x256xf32>
    %104 = arith.mulf %103, %102 : vector<1x256xf32>
    %105 = math.tanh %97 : vector<1x256xf32>
    %106 = vector.extract_strided_slice %104 {offsets = [0, 0], sizes = [1, 64], strides = [1, 1]} : vector<1x256xf32> to vector<1x64xf32>
    %107 = vector.extract_strided_slice %104 {offsets = [0, 64], sizes = [1, 64], strides = [1, 1]} : vector<1x256xf32> to vector<1x64xf32>
    %108 = vector.extract_strided_slice %105 {offsets = [0, 128], sizes = [1, 64], strides = [1, 1]} : vector<1x256xf32> to vector<1x64xf32>
    %109 = vector.extract_strided_slice %104 {offsets = [0, 192], sizes = [1, 64], strides = [1, 1]} : vector<1x256xf32> to vector<1x64xf32>
    %110 = arith.mulf %107, %84 : vector<1x64xf32>
    %111 = arith.mulf %106, %108 : vector<1x64xf32>
    %112 = arith.addf %110, %111 : vector<1x64xf32>
    %113 = math.tanh %112 : vector<1x64xf32>
    %114 = arith.mulf %109, %113 : vector<1x64xf32>
    %115 = vector.extract_strided_slice %114 {offsets = [0, 0], sizes = [1, 32], strides = [1, 1]} : vector<1x64xf32> to vector<1x32xf32>
    %116 = arith.index_cast %c3_i32 : i32 to index
    %c0_38 = arith.constant 0 : index
    %117 = vector.load %arg13[%116, %c0_38] : memref<8x64xf32, #tpu.memory_space<vmem>>, vector<1x32xf32>
    tpu.vector_store %arg13[%116, %c0_38], %115 {strides = array<i32>} : memref<8x64xf32, #tpu.memory_space<vmem>>, vector<1x32xf32>,
    %118 = vector.extract_strided_slice %114 {offsets = [0, 32], sizes = [1, 32], strides = [1, 1]} : vector<1x64xf32> to vector<1x32xf32>
    %c7_i32_39 = arith.constant 7 : i32
    %119 = arith.subi %c7_i32_39, %c3_i32 : i32
    %120 = arith.index_cast %119 : i32 to index
    %c32_40 = arith.constant 32 : index
    %121 = vector.load %arg13[%120, %c32_40] : memref<8x64xf32, #tpu.memory_space<vmem>>, vector<1x32xf32>
    tpu.vector_store %arg13[%120, %c32_40], %118 {strides = array<i32>} : memref<8x64xf32, #tpu.memory_space<vmem>>, vector<1x32xf32>,
    %c4_i32 = arith.constant 4 : i32
    %122 = arith.index_cast %c4_i32 : i32 to index
    %c0_41 = arith.constant 0 : index
    %123 = vector.load %arg12[%122, %c0_41] : memref<8x256xf32, #tpu.memory_space<vmem>>, vector<1x256xf32>
    %cst_42 = arith.constant dense<0.000000e+00> : vector<1x256xf32>
    %124 = tpu.matmul %114, %8, %cst_42 {dimension_numbers = #tpu.dot_dimension_numbers<[1], [0], [0], [1], [0, 0, 1, 1], [], []>} : vector<1x64xf32>, vector<64x256xf32>, vector<1x256xf32> -> vector<1x256xf32>
    %125 = arith.addf %123, %124 : vector<1x256xf32>
    %cst_43 = arith.constant 5.000000e-01 : f32
    %126 = vector.broadcast %cst_43 : f32 to vector<1x256xf32>
    %127 = arith.mulf %126, %125 : vector<1x256xf32>
    %128 = math.tanh %127 : vector<1x256xf32>
    %cst_44 = arith.constant 1.000000e+00 : f32
    %129 = vector.broadcast %cst_44 : f32 to vector<1x256xf32>
    %130 = arith.addf %128, %129 : vector<1x256xf32>
    %cst_45 = arith.constant 5.000000e-01 : f32
    %131 = vector.broadcast %cst_45 : f32 to vector<1x256xf32>
    %132 = arith.mulf %131, %130 : vector<1x256xf32>
    %133 = math.tanh %125 : vector<1x256xf32>
    %134 = vector.extract_strided_slice %132 {offsets = [0, 0], sizes = [1, 64], strides = [1, 1]} : vector<1x256xf32> to vector<1x64xf32>
    %135 = vector.extract_strided_slice %132 {offsets = [0, 64], sizes = [1, 64], strides = [1, 1]} : vector<1x256xf32> to vector<1x64xf32>
    %136 = vector.extract_strided_slice %133 {offsets = [0, 128], sizes = [1, 64], strides = [1, 1]} : vector<1x256xf32> to vector<1x64xf32>
    %137 = vector.extract_strided_slice %132 {offsets = [0, 192], sizes = [1, 64], strides = [1, 1]} : vector<1x256xf32> to vector<1x64xf32>
    %138 = arith.mulf %135, %112 : vector<1x64xf32>
    %139 = arith.mulf %134, %136 : vector<1x64xf32>
    %140 = arith.addf %138, %139 : vector<1x64xf32>
    %141 = math.tanh %140 : vector<1x64xf32>
    %142 = arith.mulf %137, %141 : vector<1x64xf32>
    %143 = vector.extract_strided_slice %142 {offsets = [0, 0], sizes = [1, 32], strides = [1, 1]} : vector<1x64xf32> to vector<1x32xf32>
    %144 = arith.index_cast %c4_i32 : i32 to index
    %c0_46 = arith.constant 0 : index
    %145 = vector.load %arg13[%144, %c0_46] : memref<8x64xf32, #tpu.memory_space<vmem>>, vector<1x32xf32>
    tpu.vector_store %arg13[%144, %c0_46], %143 {strides = array<i32>} : memref<8x64xf32, #tpu.memory_space<vmem>>, vector<1x32xf32>,
    %146 = vector.extract_strided_slice %142 {offsets = [0, 32], sizes = [1, 32], strides = [1, 1]} : vector<1x64xf32> to vector<1x32xf32>
    %c7_i32_47 = arith.constant 7 : i32
    %147 = arith.subi %c7_i32_47, %c4_i32 : i32
    %148 = arith.index_cast %147 : i32 to index
    %c32_48 = arith.constant 32 : index
    %149 = vector.load %arg13[%148, %c32_48] : memref<8x64xf32, #tpu.memory_space<vmem>>, vector<1x32xf32>
    tpu.vector_store %arg13[%148, %c32_48], %146 {strides = array<i32>} : memref<8x64xf32, #tpu.memory_space<vmem>>, vector<1x32xf32>,
    %c5_i32 = arith.constant 5 : i32
    %150 = arith.index_cast %c5_i32 : i32 to index
    %c0_49 = arith.constant 0 : index
    %151 = vector.load %arg12[%150, %c0_49] : memref<8x256xf32, #tpu.memory_space<vmem>>, vector<1x256xf32>
    %cst_50 = arith.constant dense<0.000000e+00> : vector<1x256xf32>
    %152 = tpu.matmul %142, %8, %cst_50 {dimension_numbers = #tpu.dot_dimension_numbers<[1], [0], [0], [1], [0, 0, 1, 1], [], []>} : vector<1x64xf32>, vector<64x256xf32>, vector<1x256xf32> -> vector<1x256xf32>
    %153 = arith.addf %151, %152 : vector<1x256xf32>
    %cst_51 = arith.constant 5.000000e-01 : f32
    %154 = vector.broadcast %cst_51 : f32 to vector<1x256xf32>
    %155 = arith.mulf %154, %153 : vector<1x256xf32>
    %156 = math.tanh %155 : vector<1x256xf32>
    %cst_52 = arith.constant 1.000000e+00 : f32
    %157 = vector.broadcast %cst_52 : f32 to vector<1x256xf32>
    %158 = arith.addf %156, %157 : vector<1x256xf32>
    %cst_53 = arith.constant 5.000000e-01 : f32
    %159 = vector.broadcast %cst_53 : f32 to vector<1x256xf32>
    %160 = arith.mulf %159, %158 : vector<1x256xf32>
    %161 = math.tanh %153 : vector<1x256xf32>
    %162 = vector.extract_strided_slice %160 {offsets = [0, 0], sizes = [1, 64], strides = [1, 1]} : vector<1x256xf32> to vector<1x64xf32>
    %163 = vector.extract_strided_slice %160 {offsets = [0, 64], sizes = [1, 64], strides = [1, 1]} : vector<1x256xf32> to vector<1x64xf32>
    %164 = vector.extract_strided_slice %161 {offsets = [0, 128], sizes = [1, 64], strides = [1, 1]} : vector<1x256xf32> to vector<1x64xf32>
    %165 = vector.extract_strided_slice %160 {offsets = [0, 192], sizes = [1, 64], strides = [1, 1]} : vector<1x256xf32> to vector<1x64xf32>
    %166 = arith.mulf %163, %140 : vector<1x64xf32>
    %167 = arith.mulf %162, %164 : vector<1x64xf32>
    %168 = arith.addf %166, %167 : vector<1x64xf32>
    %169 = math.tanh %168 : vector<1x64xf32>
    %170 = arith.mulf %165, %169 : vector<1x64xf32>
    %171 = vector.extract_strided_slice %170 {offsets = [0, 0], sizes = [1, 32], strides = [1, 1]} : vector<1x64xf32> to vector<1x32xf32>
    %172 = arith.index_cast %c5_i32 : i32 to index
    %c0_54 = arith.constant 0 : index
    %173 = vector.load %arg13[%172, %c0_54] : memref<8x64xf32, #tpu.memory_space<vmem>>, vector<1x32xf32>
    tpu.vector_store %arg13[%172, %c0_54], %171 {strides = array<i32>} : memref<8x64xf32, #tpu.memory_space<vmem>>, vector<1x32xf32>,
    %174 = vector.extract_strided_slice %170 {offsets = [0, 32], sizes = [1, 32], strides = [1, 1]} : vector<1x64xf32> to vector<1x32xf32>
    %c7_i32_55 = arith.constant 7 : i32
    %175 = arith.subi %c7_i32_55, %c5_i32 : i32
    %176 = arith.index_cast %175 : i32 to index
    %c32_56 = arith.constant 32 : index
    %177 = vector.load %arg13[%176, %c32_56] : memref<8x64xf32, #tpu.memory_space<vmem>>, vector<1x32xf32>
    tpu.vector_store %arg13[%176, %c32_56], %174 {strides = array<i32>} : memref<8x64xf32, #tpu.memory_space<vmem>>, vector<1x32xf32>,
    %c6_i32 = arith.constant 6 : i32
    %178 = arith.index_cast %c6_i32 : i32 to index
    %c0_57 = arith.constant 0 : index
    %179 = vector.load %arg12[%178, %c0_57] : memref<8x256xf32, #tpu.memory_space<vmem>>, vector<1x256xf32>
    %cst_58 = arith.constant dense<0.000000e+00> : vector<1x256xf32>
    %180 = tpu.matmul %170, %8, %cst_58 {dimension_numbers = #tpu.dot_dimension_numbers<[1], [0], [0], [1], [0, 0, 1, 1], [], []>} : vector<1x64xf32>, vector<64x256xf32>, vector<1x256xf32> -> vector<1x256xf32>
    %181 = arith.addf %179, %180 : vector<1x256xf32>
    %cst_59 = arith.constant 5.000000e-01 : f32
    %182 = vector.broadcast %cst_59 : f32 to vector<1x256xf32>
    %183 = arith.mulf %182, %181 : vector<1x256xf32>
    %184 = math.tanh %183 : vector<1x256xf32>
    %cst_60 = arith.constant 1.000000e+00 : f32
    %185 = vector.broadcast %cst_60 : f32 to vector<1x256xf32>
    %186 = arith.addf %184, %185 : vector<1x256xf32>
    %cst_61 = arith.constant 5.000000e-01 : f32
    %187 = vector.broadcast %cst_61 : f32 to vector<1x256xf32>
    %188 = arith.mulf %187, %186 : vector<1x256xf32>
    %189 = math.tanh %181 : vector<1x256xf32>
    %190 = vector.extract_strided_slice %188 {offsets = [0, 0], sizes = [1, 64], strides = [1, 1]} : vector<1x256xf32> to vector<1x64xf32>
    %191 = vector.extract_strided_slice %188 {offsets = [0, 64], sizes = [1, 64], strides = [1, 1]} : vector<1x256xf32> to vector<1x64xf32>
    %192 = vector.extract_strided_slice %189 {offsets = [0, 128], sizes = [1, 64], strides = [1, 1]} : vector<1x256xf32> to vector<1x64xf32>
    %193 = vector.extract_strided_slice %188 {offsets = [0, 192], sizes = [1, 64], strides = [1, 1]} : vector<1x256xf32> to vector<1x64xf32>
    %194 = arith.mulf %191, %168 : vector<1x64xf32>
    %195 = arith.mulf %190, %192 : vector<1x64xf32>
    %196 = arith.addf %194, %195 : vector<1x64xf32>
    %197 = math.tanh %196 : vector<1x64xf32>
    %198 = arith.mulf %193, %197 : vector<1x64xf32>
    %199 = vector.extract_strided_slice %198 {offsets = [0, 0], sizes = [1, 32], strides = [1, 1]} : vector<1x64xf32> to vector<1x32xf32>
    %200 = arith.index_cast %c6_i32 : i32 to index
    %c0_62 = arith.constant 0 : index
    %201 = vector.load %arg13[%200, %c0_62] : memref<8x64xf32, #tpu.memory_space<vmem>>, vector<1x32xf32>
    tpu.vector_store %arg13[%200, %c0_62], %199 {strides = array<i32>} : memref<8x64xf32, #tpu.memory_space<vmem>>, vector<1x32xf32>,
    %202 = vector.extract_strided_slice %198 {offsets = [0, 32], sizes = [1, 32], strides = [1, 1]} : vector<1x64xf32> to vector<1x32xf32>
    %c7_i32_63 = arith.constant 7 : i32
    %203 = arith.subi %c7_i32_63, %c6_i32 : i32
    %204 = arith.index_cast %203 : i32 to index
    %c32_64 = arith.constant 32 : index
    %205 = vector.load %arg13[%204, %c32_64] : memref<8x64xf32, #tpu.memory_space<vmem>>, vector<1x32xf32>
    tpu.vector_store %arg13[%204, %c32_64], %202 {strides = array<i32>} : memref<8x64xf32, #tpu.memory_space<vmem>>, vector<1x32xf32>,
    %c7_i32_65 = arith.constant 7 : i32
    %206 = arith.index_cast %c7_i32_65 : i32 to index
    %c0_66 = arith.constant 0 : index
    %207 = vector.load %arg12[%206, %c0_66] : memref<8x256xf32, #tpu.memory_space<vmem>>, vector<1x256xf32>
    %cst_67 = arith.constant dense<0.000000e+00> : vector<1x256xf32>
    %208 = tpu.matmul %198, %8, %cst_67 {dimension_numbers = #tpu.dot_dimension_numbers<[1], [0], [0], [1], [0, 0, 1, 1], [], []>} : vector<1x64xf32>, vector<64x256xf32>, vector<1x256xf32> -> vector<1x256xf32>
    %209 = arith.addf %207, %208 : vector<1x256xf32>
    %cst_68 = arith.constant 5.000000e-01 : f32
    %210 = vector.broadcast %cst_68 : f32 to vector<1x256xf32>
    %211 = arith.mulf %210, %209 : vector<1x256xf32>
    %212 = math.tanh %211 : vector<1x256xf32>
    %cst_69 = arith.constant 1.000000e+00 : f32
    %213 = vector.broadcast %cst_69 : f32 to vector<1x256xf32>
    %214 = arith.addf %212, %213 : vector<1x256xf32>
    %cst_70 = arith.constant 5.000000e-01 : f32
    %215 = vector.broadcast %cst_70 : f32 to vector<1x256xf32>
    %216 = arith.mulf %215, %214 : vector<1x256xf32>
    %217 = math.tanh %209 : vector<1x256xf32>
    %218 = vector.extract_strided_slice %216 {offsets = [0, 0], sizes = [1, 64], strides = [1, 1]} : vector<1x256xf32> to vector<1x64xf32>
    %219 = vector.extract_strided_slice %216 {offsets = [0, 64], sizes = [1, 64], strides = [1, 1]} : vector<1x256xf32> to vector<1x64xf32>
    %220 = vector.extract_strided_slice %217 {offsets = [0, 128], sizes = [1, 64], strides = [1, 1]} : vector<1x256xf32> to vector<1x64xf32>
    %221 = vector.extract_strided_slice %216 {offsets = [0, 192], sizes = [1, 64], strides = [1, 1]} : vector<1x256xf32> to vector<1x64xf32>
    %222 = arith.mulf %219, %196 : vector<1x64xf32>
    %223 = arith.mulf %218, %220 : vector<1x64xf32>
    %224 = arith.addf %222, %223 : vector<1x64xf32>
    %225 = math.tanh %224 : vector<1x64xf32>
    %226 = arith.mulf %221, %225 : vector<1x64xf32>
    %227 = vector.extract_strided_slice %226 {offsets = [0, 0], sizes = [1, 32], strides = [1, 1]} : vector<1x64xf32> to vector<1x32xf32>
    %228 = arith.index_cast %c7_i32_65 : i32 to index
    %c0_71 = arith.constant 0 : index
    %229 = vector.load %arg13[%228, %c0_71] : memref<8x64xf32, #tpu.memory_space<vmem>>, vector<1x32xf32>
    tpu.vector_store %arg13[%228, %c0_71], %227 {strides = array<i32>} : memref<8x64xf32, #tpu.memory_space<vmem>>, vector<1x32xf32>,
    %230 = vector.extract_strided_slice %226 {offsets = [0, 32], sizes = [1, 32], strides = [1, 1]} : vector<1x64xf32> to vector<1x32xf32>
    %c7_i32_72 = arith.constant 7 : i32
    %231 = arith.subi %c7_i32_72, %c7_i32_65 : i32
    %232 = arith.index_cast %231 : i32 to index
    %c32_73 = arith.constant 32 : index
    %233 = vector.load %arg13[%232, %c32_73] : memref<8x64xf32, #tpu.memory_space<vmem>>, vector<1x32xf32>
    tpu.vector_store %arg13[%232, %c32_73], %230 {strides = array<i32>} : memref<8x64xf32, #tpu.memory_space<vmem>>, vector<1x32xf32>,
    %c8_i32 = arith.constant 8 : i32
    %c0_74 = arith.constant 0 : index
    %c0_75 = arith.constant 0 : index
    %234 = vector.load %arg13[%c0_74, %c0_75] : memref<8x64xf32, #tpu.memory_space<vmem>>, vector<8x64xf32>
    %cst_76 = arith.constant dense<0.000000e+00> : vector<8x8xf32>
    %235 = tpu.matmul %234, %234, %cst_76 {dimension_numbers = #tpu.dot_dimension_numbers<[1], [1], [0], [0], [0, 0, 1, 0], [], []>} : vector<8x64xf32>, vector<8x64xf32>, vector<8x8xf32> -> vector<8x8xf32>
    %cst_77 = arith.constant 1.250000e-01 : f32
    %236 = vector.broadcast %cst_77 : f32 to vector<8x8xf32>
    %237 = arith.mulf %235, %236 : vector<8x8xf32>
    %cst_78 = arith.constant dense<0xFF800000> : vector<8xf32>
    %238 = vector.multi_reduction <maximumf>, %237, %cst_78 [1] : vector<8x8xf32> to vector<8xf32>
    %239 = vector.shape_cast %238 : vector<8xf32> to vector<8x1xf32>
    %240 = vector.broadcast %239 : vector<8x1xf32> to vector<8x8xf32>
    %241 = arith.subf %237, %240 : vector<8x8xf32>
    %242 = math.exp %241 : vector<8x8xf32>
    %cst_79 = arith.constant dense<0.000000e+00> : vector<8xf32>
    %243 = vector.multi_reduction <add>, %242, %cst_79 [1] : vector<8x8xf32> to vector<8xf32>
    %244 = vector.shape_cast %243 : vector<8xf32> to vector<8x1xf32>
    %245 = vector.broadcast %244 : vector<8x1xf32> to vector<8x8xf32>
    %246 = arith.divf %242, %245 : vector<8x8xf32>
    %cst_80 = arith.constant dense<0.000000e+00> : vector<8x64xf32>
    %247 = tpu.matmul %246, %234, %cst_80 {dimension_numbers = #tpu.dot_dimension_numbers<[1], [0], [0], [1], [0, 0, 1, 1], [], []>} : vector<8x8xf32>, vector<8x64xf32>, vector<8x64xf32> -> vector<8x64xf32>
    %cst_81 = arith.constant dense<0xFF800000> : vector<64xf32>
    %248 = vector.multi_reduction <maximumf>, %247, %cst_81 [0] : vector<8x64xf32> to vector<64xf32>
    %249 = vector.shape_cast %248 : vector<64xf32> to vector<1x64xf32>
    %c0_82 = arith.constant 0 : index
    %c0_83 = arith.constant 0 : index
    %c0_84 = arith.constant 0 : index
    %250 = vector.load %arg2[%c0_82, %c0_83, %c0_84] : memref<1x8x32xf32, #tpu.memory_space<vmem>>, vector<1x8x32xf32>
    %251 = vector.shape_cast %250 : vector<1x8x32xf32> to vector<8x32xf32>
    %c0_85 = arith.constant 0 : index
    %c0_86 = arith.constant 0 : index
    %252 = vector.load %arg10[%c0_85, %c0_86] : memref<1x54xf32, #tpu.memory_space<vmem>>, vector<1x48xf32>
    %c0_87 = arith.constant 0 : index
    %c48 = arith.constant 48 : index
    %253 = vector.load %arg10[%c0_87, %c48] : memref<1x54xf32, #tpu.memory_space<vmem>>, vector<1x2xf32>
    %c0_88 = arith.constant 0 : index
    %c50 = arith.constant 50 : index
    %254 = vector.load %arg10[%c0_88, %c50] : memref<1x54xf32, #tpu.memory_space<vmem>>, vector<1x4xf32>
    %255 = tpu.iota {dimensions = array<i32: 0>} : vector<8x32xi32>
    %c0_i32_89 = arith.constant 0 : i32
    %256 = vector.broadcast %c0_i32_89 : i32 to vector<8x32xi32>
    %257 = arith.cmpi sgt, %255, %256 : vector<8x32xi32>
    %c1_i32_90 = arith.constant 1 : i32
    %258 = tpu.dynamic_rotate %251 by %c1_i32_90 dim 0 : vector<8x32xf32>, i32 -> vector<8x32xf32>
    %cst_91 = arith.constant 0.000000e+00 : f32
    %259 = vector.broadcast %cst_91 : f32 to vector<8x32xf32>
    %260 = arith.select %257, %258, %259 : vector<8x32xi1>, vector<8x32xf32>
    %c7_i32_92 = arith.constant 7 : i32
    %261 = vector.broadcast %c7_i32_92 : i32 to vector<8x32xi32>
    %262 = arith.cmpi slt, %255, %261 : vector<8x32xi32>
    %c7_i32_93 = arith.constant 7 : i32
    %263 = tpu.dynamic_rotate %251 by %c7_i32_93 dim 0 : vector<8x32xf32>, i32 -> vector<8x32xf32>
    %cst_94 = arith.constant 0.000000e+00 : f32
    %264 = vector.broadcast %cst_94 : f32 to vector<8x32xf32>
    %265 = arith.select %262, %263, %264 : vector<8x32xi1>, vector<8x32xf32>
    %266 = tpu.concatenate %260, %251, %265 in 1 : vector<8x32xf32>, vector<8x32xf32>, vector<8x32xf32> -> vector<8x96xf32>
    %c0_95 = arith.constant 0 : index
    %c0_96 = arith.constant 0 : index
    %267 = vector.load %arg7[%c0_95, %c0_96] : memref<64x144xf32, #tpu.memory_space<vmem>>, vector<64x144xf32>
    %cst_97 = arith.constant dense<0.000000e+00> : vector<1x144xf32>
    %268 = tpu.matmul %249, %267, %cst_97 {dimension_numbers = #tpu.dot_dimension_numbers<[1], [0], [0], [1], [0, 0, 1, 1], [], []>} : vector<1x64xf32>, vector<64x144xf32>, vector<1x144xf32> -> vector<1x144xf32>
    %269 = vector.extract_strided_slice %268 {offsets = [0, 0], sizes = [1, 48], strides = [1, 1]} : vector<1x144xf32> to vector<1x48xf32>
    %270 = vector.extract_strided_slice %268 {offsets = [0, 48], sizes = [1, 48], strides = [1, 1]} : vector<1x144xf32> to vector<1x48xf32>
    %271 = vector.extract_strided_slice %268 {offsets = [0, 96], sizes = [1, 48], strides = [1, 1]} : vector<1x144xf32> to vector<1x48xf32>
    %272 = tpu.iota {dimensions = array<i32: 0>} : vector<8x48xi32>
    %c0_i32_98 = arith.constant 0 : i32
    %273 = vector.broadcast %c0_i32_98 : i32 to vector<8x48xi32>
    %274 = arith.cmpi eq, %272, %273 : vector<8x48xi32>
    %cst_99 = arith.constant 0.000000e+00 : f32
    %275 = vector.shape_cast %270 : vector<1x48xf32> to vector<1x48xf32>
    %276 = vector.broadcast %275 : vector<1x48xf32> to vector<8x48xf32>
    %277 = vector.broadcast %cst_99 : f32 to vector<8x48xf32>
    %278 = arith.select %274, %276, %277 : vector<8x48xi1>, vector<8x48xf32>
    %279 = vector.broadcast %269 : vector<1x48xf32> to vector<8x48xf32>
    %280 = arith.subf %279, %278 : vector<8x48xf32>
    %c7_i32_100 = arith.constant 7 : i32
    %281 = vector.broadcast %c7_i32_100 : i32 to vector<8x48xi32>
    %282 = arith.cmpi eq, %272, %281 : vector<8x48xi32>
    %cst_101 = arith.constant 0.000000e+00 : f32
    %283 = vector.shape_cast %271 : vector<1x48xf32> to vector<1x48xf32>
    %284 = vector.broadcast %283 : vector<1x48xf32> to vector<8x48xf32>
    %285 = vector.broadcast %cst_101 : f32 to vector<8x48xf32>
    %286 = arith.select %282, %284, %285 : vector<8x48xi1>, vector<8x48xf32>
    %287 = arith.subf %280, %286 : vector<8x48xf32>
    %c0_102 = arith.constant 0 : index
    %c0_103 = arith.constant 0 : index
    %288 = vector.load %arg6[%c0_102, %c0_103] : memref<96x48xf32, #tpu.memory_space<vmem>>, vector<96x48xf32>
    %cst_104 = arith.constant dense<0.000000e+00> : vector<8x48xf32>
    %289 = tpu.matmul %266, %288, %cst_104 {dimension_numbers = #tpu.dot_dimension_numbers<[1], [0], [0], [1], [0, 0, 1, 1], [], []>} : vector<8x96xf32>, vector<96x48xf32>, vector<8x48xf32> -> vector<8x48xf32>
    %290 = vector.broadcast %252 : vector<1x48xf32> to vector<8x48xf32>
    %291 = arith.addf %289, %290 : vector<8x48xf32>
    %292 = arith.addf %291, %287 : vector<8x48xf32>
    %293 = math.tanh %292 : vector<8x48xf32>
    %294 = tpu.iota {dimensions = array<i32: 0>} : vector<8x48xi32>
    %c0_i32_105 = arith.constant 0 : i32
    %295 = vector.broadcast %c0_i32_105 : i32 to vector<8x48xi32>
    %296 = arith.cmpi sgt, %294, %295 : vector<8x48xi32>
    %c1_i32_106 = arith.constant 1 : i32
    %297 = tpu.dynamic_rotate %293 by %c1_i32_106 dim 0 : vector<8x48xf32>, i32 -> vector<8x48xf32>
    %cst_107 = arith.constant 0.000000e+00 : f32
    %298 = vector.broadcast %cst_107 : f32 to vector<8x48xf32>
    %299 = arith.select %296, %297, %298 : vector<8x48xi1>, vector<8x48xf32>
    %c7_i32_108 = arith.constant 7 : i32
    %300 = vector.broadcast %c7_i32_108 : i32 to vector<8x48xi32>
    %301 = arith.cmpi slt, %294, %300 : vector<8x48xi32>
    %c7_i32_109 = arith.constant 7 : i32
    %302 = tpu.dynamic_rotate %293 by %c7_i32_109 dim 0 : vector<8x48xf32>, i32 -> vector<8x48xf32>
    %cst_110 = arith.constant 0.000000e+00 : f32
    %303 = vector.broadcast %cst_110 : f32 to vector<8x48xf32>
    %304 = arith.select %301, %302, %303 : vector<8x48xi1>, vector<8x48xf32>
    %305 = tpu.concatenate %299, %293, %304 in 1 : vector<8x48xf32>, vector<8x48xf32>, vector<8x48xf32> -> vector<8x144xf32>
    %c0_111 = arith.constant 0 : index
    %c0_112 = arith.constant 0 : index
    %306 = vector.load %arg8[%c0_111, %c0_112] : memref<144x2xf32, #tpu.memory_space<vmem>>, vector<144x2xf32>
    %cst_113 = arith.constant dense<0.000000e+00> : vector<8x2xf32>
    %307 = tpu.matmul %305, %306, %cst_113 {dimension_numbers = #tpu.dot_dimension_numbers<[1], [0], [0], [1], [0, 0, 1, 1], [], []>} : vector<8x144xf32>, vector<144x2xf32>, vector<8x2xf32> -> vector<8x2xf32>
    %308 = vector.broadcast %253 : vector<1x2xf32> to vector<8x2xf32>
    %309 = arith.addf %307, %308 : vector<8x2xf32>
    %cst_114 = arith.constant dense<0xFF800000> : vector<2xf32>
    %310 = vector.multi_reduction <maximumf>, %309, %cst_114 [0] : vector<8x2xf32> to vector<2xf32>
    %311 = vector.shape_cast %310 : vector<2xf32> to vector<1x2xf32>
    %312 = vector.broadcast %311 : vector<1x2xf32> to vector<8x2xf32>
    %313 = arith.subf %309, %312 : vector<8x2xf32>
    %314 = math.exp %313 : vector<8x2xf32>
    %cst_115 = arith.constant dense<0.000000e+00> : vector<2xf32>
    %315 = vector.multi_reduction <add>, %314, %cst_115 [0] : vector<8x2xf32> to vector<2xf32>
    %316 = vector.shape_cast %315 : vector<2xf32> to vector<1x2xf32>
    %317 = vector.broadcast %316 : vector<1x2xf32> to vector<8x2xf32>
    %318 = arith.divf %314, %317 : vector<8x2xf32>
    %319 = vector.extract_strided_slice %318 {offsets = [0, 0], sizes = [8, 1], strides = [1, 1]} : vector<8x2xf32> to vector<8x1xf32>
    %cst_116 = arith.constant 5.000000e-01 : f32
    %320 = vector.broadcast %cst_116 : f32 to vector<8x1xf32>
    %321 = arith.mulf %320, %319 : vector<8x1xf32>
    %322 = vector.extract_strided_slice %318 {offsets = [0, 1], sizes = [8, 1], strides = [1, 1]} : vector<8x2xf32> to vector<8x1xf32>
    %cst_117 = arith.constant 5.000000e-01 : f32
    %323 = vector.broadcast %cst_117 : f32 to vector<8x1xf32>
    %324 = arith.mulf %323, %322 : vector<8x1xf32>
    %325 = arith.addf %321, %324 : vector<8x1xf32>
    %cst_118 = arith.constant dense<0xFF800000> : vector<1xf32>
    %326 = vector.multi_reduction <maximumf>, %325, %cst_118 [0] : vector<8x1xf32> to vector<1xf32>
    %327 = vector.shape_cast %326 : vector<1xf32> to vector<1x1xf32>
    %328 = vector.broadcast %327 : vector<1x1xf32> to vector<8x1xf32>
    %329 = arith.subf %325, %328 : vector<8x1xf32>
    %330 = math.exp %329 : vector<8x1xf32>
    %cst_119 = arith.constant dense<0.000000e+00> : vector<1xf32>
    %331 = vector.multi_reduction <add>, %330, %cst_119 [0] : vector<8x1xf32> to vector<1xf32>
    %332 = vector.shape_cast %331 : vector<1xf32> to vector<1x1xf32>
    %333 = vector.broadcast %332 : vector<1x1xf32> to vector<8x1xf32>
    %334 = arith.divf %330, %333 : vector<8x1xf32>
    %335 = vector.broadcast %334 : vector<8x1xf32> to vector<8x32xf32>
    %336 = arith.mulf %335, %251 : vector<8x32xf32>
    %cst_120 = arith.constant dense<0.000000e+00> : vector<32xf32>
    %337 = vector.multi_reduction <add>, %336, %cst_120 [0] : vector<8x32xf32> to vector<32xf32>
    %338 = vector.shape_cast %337 : vector<32xf32> to vector<1x32xf32>
    %339 = tpu.concatenate %249, %338 in 1 : vector<1x64xf32>, vector<1x32xf32> -> vector<1x96xf32>
    %c0_121 = arith.constant 0 : index
    %c0_122 = arith.constant 0 : index
    %340 = vector.load %arg9[%c0_121, %c0_122] : memref<96x4xf32, #tpu.memory_space<vmem>>, vector<96x4xf32>
    %cst_123 = arith.constant dense<0.000000e+00> : vector<1x4xf32>
    %341 = tpu.matmul %339, %340, %cst_123 {dimension_numbers = #tpu.dot_dimension_numbers<[1], [0], [0], [1], [0, 0, 1, 1], [], []>} : vector<1x96xf32>, vector<96x4xf32>, vector<1x4xf32> -> vector<1x4xf32>
    %342 = arith.addf %341, %254 : vector<1x4xf32>
    %c0_124 = arith.constant 0 : index
    %c0_125 = arith.constant 0 : index
    %c0_126 = arith.constant 0 : index
    %343 = vector.load %arg11[%c0_124, %c0_125, %c0_126] : memref<1x1x4xf32, #tpu.memory_space<vmem>>, vector<1x1x4xf32>
    %344 = vector.shape_cast %343 : vector<1x1x4xf32> to vector<1x4xf32>
    %345 = vector.shape_cast %342 : vector<1x4xf32> to vector<1x1x4xf32>
    tpu.vector_store %arg11[%c0_124, %c0_125, %c0_126], %345 {strides = array<i32>} : memref<1x1x4xf32, #tpu.memory_space<vmem>>, vector<1x1x4xf32>,
    return
  }
  func.func @transform_0(%arg0: i32) -> (i32, i32, i32) {
    %c0_i32 = arith.constant 0 : i32
    %c0_i32_0 = arith.constant 0 : i32
    %c0_i32_1 = arith.constant 0 : i32
    return %arg0, %c0_i32, %c0_i32_0 : i32, i32, i32
  }
  func.func @transform_1(%arg0: i32) -> (i32, i32, i32) {
    %c0_i32 = arith.constant 0 : i32
    %c0_i32_0 = arith.constant 0 : i32
    %c0_i32_1 = arith.constant 0 : i32
    return %arg0, %c0_i32, %c0_i32_0 : i32, i32, i32
  }
  func.func @transform_2(%arg0: i32) -> (i32, i32) {
    %c0_i32 = arith.constant 0 : i32
    %c0_i32_0 = arith.constant 0 : i32
    %c0_i32_1 = arith.constant 0 : i32
    return %c0_i32, %c0_i32_0 : i32, i32
  }
  func.func @transform_3(%arg0: i32) -> (i32, i32) {
    %c0_i32 = arith.constant 0 : i32
    %c0_i32_0 = arith.constant 0 : i32
    %c0_i32_1 = arith.constant 0 : i32
    return %c0_i32, %c0_i32_0 : i32, i32
  }
  func.func @transform_4(%arg0: i32) -> (i32, i32) {
    %c0_i32 = arith.constant 0 : i32
    %c0_i32_0 = arith.constant 0 : i32
    %c0_i32_1 = arith.constant 0 : i32
    return %c0_i32, %c0_i32_0 : i32, i32
  }
  func.func @transform_5(%arg0: i32) -> (i32, i32) {
    %c0_i32 = arith.constant 0 : i32
    %c0_i32_0 = arith.constant 0 : i32
    %c0_i32_1 = arith.constant 0 : i32
    return %c0_i32, %c0_i32_0 : i32, i32
  }
  func.func @transform_6(%arg0: i32) -> (i32, i32) {
    %c0_i32 = arith.constant 0 : i32
    %c0_i32_0 = arith.constant 0 : i32
    %c0_i32_1 = arith.constant 0 : i32
    return %c0_i32, %c0_i32_0 : i32, i32
  }
  func.func @transform_7(%arg0: i32) -> (i32, i32) {
    %c0_i32 = arith.constant 0 : i32
    %c0_i32_0 = arith.constant 0 : i32
    %c0_i32_1 = arith.constant 0 : i32
    return %c0_i32, %c0_i32_0 : i32, i32
  }
  func.func @transform_8(%arg0: i32) -> (i32, i32) {
    %c0_i32 = arith.constant 0 : i32
    %c0_i32_0 = arith.constant 0 : i32
    %c0_i32_1 = arith.constant 0 : i32
    return %c0_i32, %c0_i32_0 : i32, i32
  }
  func.func @transform_9(%arg0: i32) -> (i32, i32) {
    %c0_i32 = arith.constant 0 : i32
    %c0_i32_0 = arith.constant 0 : i32
    %c0_i32_1 = arith.constant 0 : i32
    return %c0_i32, %c0_i32_0 : i32, i32
  }
  func.func @transform_10(%arg0: i32) -> (i32, i32, i32) {
    %c0_i32 = arith.constant 0 : i32
    %c0_i32_0 = arith.constant 0 : i32
    %c0_i32_1 = arith.constant 0 : i32
    return %arg0, %c0_i32, %c0_i32_0 : i32, i32, i32
  }
}

</mosaic_0001>

<bundles_post_ra>
// kernel: stcka_forward.1
= control target key start
LH: loop header
LB: loop body
LE: loop exit
PB: predicated region body
PF: predicated region fallthrough
CT: control target
= control target key end

     0   :  { %15 = vsyncpa [#allocation5], 0  ;;  %s2524_s0 = inlined_call_operand.vmem [shape: f32[2,8,64], index: 0, kind: input, shape index: {}]   ;;  %s2525_s1 = inlined_call_operand.vmem [shape: f32[2,8,32], index: 1, kind: input, shape index: {}]   ;;  %s2526_s2 = inlined_call_operand.vmem [shape: f32[64,256], index: 2, kind: input, shape index: {}]   ;;  %s2527_s3 = inlined_call_operand.vmem [shape: f32[64,256], index: 3, kind: input, shape index: {}]   ;;  %s2528_s4 = inlined_call_operand.vmem [shape: f32[1,256], index: 4, kind: input, shape index: {}]   ;;  %s2529_s5 = inlined_call_operand.vmem [shape: f32[96,48], index: 5, kind: input, shape index: {}]   ;;  %s2530_s6 = inlined_call_operand.vmem [shape: f32[64,144], index: 6, kind: input, shape index: {}]   ;;  %s2531_s7 = inlined_call_operand.vmem [shape: f32[144,2], index: 7, kind: input, shape index: {}]   ;;  %s2532_s8 = inlined_call_operand.vmem [shape: f32[96,4], index: 8, kind: input, shape index: {}]   ;;  %s2533_s9 = inlined_call_operand.vmem [shape: f32[1,54], index: 9, kind: input, shape index: {}]   ;;  %s2534_s10 = inlined_call_operand.hbm [shape: f32[2,1,4], index: 10, kind: output, shape index: {}]  }
   0x1   :  { %17 = vsyncpa [#allocation5 + $0x1], 0  ;;  %s1874_s13 = smov 0   ;;  %s1876_s14 = smov 0  }
   0x2   :  { %s1878_s15 = smov 0   ;;  %s1880_s16 = smov 0  }
   0x3 LB: > { %2538 = sst [smem:[#allocation7_spill]] %s1804_s15  ;;  %s1895_s17 = sadd.s32 4294967295, %s1808_s16   ;;  %s1808_s16 = sphi %s1880_s16, %s2547_s16   ;;  %s1804_s15 = sphi %s1878_s15, %s2544_s15   ;;  %s1800_s14 = sphi %s1876_s14, %s2546_s14   ;;  %s1796_s13 = sphi %s1874_s13, %s2545_s13  }
   0x4   : > { %s1601_s18 = sadd.s32 4294967294, %s1808_s16   ;;  %s1899_s19 = sadd.s32 1, %s1808_s16  }
   0x5   : > { %s250_s20 = sadd.s32 1, %s1804_s15  ;;  %s247_s21 = ssub.s32 %s1808_s16, %s1899_s19 }
   0x6   : > { %p260_p0 = scmp.ne.s32.totalorder %s1804_s15, %s1800_s14  ;;  %p248_p1 = scmp.eq.s32.totalorder %s247_s21, 0 }
   0x7   : > { %p261_p2 = scmp.eq.s32.totalorder %s1895_s17, 1  ;;  %p266_p3 = scmp.ne.s32.totalorder %s1800_s14, %s1796_s13 }
   0x8   : > { %p267_p4 = scmp.eq.s32.totalorder %s1601_s18, 1  ;;  %p1604_p7 = scmp.ge.s32.totalorder %s1808_s16, 1 }
   0x9   : > { %s1910_s22 = scalar_select %p248_p1, %s1804_s15, %s250_s20  }
   0xa   : > { %p1912_p5 = por %p261_p2, %p260_p0  ;;  %p1916_p6 = por %p267_p4, %p266_p3 }
   0xb   : > { %2539 = sst [smem:[#allocation8_spill]] %s1910_s22  ;;  %p323_p8 = scmp.lt.s32.totalorder %s1808_s16, 3 }
   0xd   : > { %p324_p9 = pnand %p1604_p7, %p323_p8 }
   0xe   : > { %p363_p10 = scmp.lt.s32.totalorder (!%p324_p9), %s1895_s17, 1  ;;  %s2536_s12 = smov (!%p324_p9), 64  }
   0xf   : > { %327 = sbr.rel (%p324_p9) target bundleno = 4612 (0x1204), region = 60  ;;  %s1812_s22 = smov (!%p324_p9), 32  }
  0x10   : > { %s1813_s15 = smov (!%p324_p9), 80   ;;  %s1814_s29 = smov (!%p324_p9), 48  }
  0x11   : > { %s1816_s11 = smov (!%p324_p9), 127   ;;  %s361_s21 = sand.u32 (!%p324_p9), 1, %s1800_s14  }
  0x12   : > { %s362_s27 = scalar_lea.vmem (!%p324_p9), [#allocation4], %s361_s21 }
  0x14   : > { %v386_v0 = vld [vmem:[%s2526_s2 + $0x70] sm:$0xff]  ;;  %v387_v1 = vld [vmem:[%s2526_s2 + $0x78] sm:$0xff]  ;;  %v384_v3 = vld [vmem:[%s2526_s2 + $0x60] sm:$0xff]  ;;  %s1971_s25 = scalar_select %p363_p10, %s1895_s17, 1  ;;  %vm394_vm0 = vcmask 523264   ;;  %v1810_v33 = vmov 0.0  }
  0x15   : > { %v1931_v2 = vld [vmem:[%s2527_s3 + $0x78] sm:$0xff]  ;;  %406 = vmatpush.msra.mxu0 %v386_v0  ;;  %426 = vmatpush.msra.mxu1 %v387_v1  ;;  %v385_v4 = vld [vmem:[%s2526_s2 + $0x68] sm:$0xff]  ;;  %v1943_v5 = vld [vmem:[%s2527_s3 + $0x70] sm:$0xff]  ;;  %vm503_vm1 = vcmask 1040384   ;;  %vm533_vm2 = vcmask 253952   ;;  %vm535_vm3 = vcmask 516352  }
  0x16   : > { %488 = vmatpush.msra.mxu3 %v1931_v2  ;;  %468 = vmatpush.msra.mxu2 %v1943_v5  ;;  %v1950_v6 = vld [vmem:[%s2527_s3 + $0x68] sm:$0xff]  ;;  %v382_v7 = vld [vmem:[%s2526_s2 + $0x50] sm:$0xff]  ;;  %v383_v8 = vld [vmem:[%s2526_s2 + $0x58] sm:$0xff]  ;;  %s1605_s20 = sshll.u32 %s1971_s25, 3  ;;  %vm1115_vm4 = vcmask 64512   ;;  %vm1188_vm11 = vcmask 261120   ;;  %s1530_s25 = scalar_lea.hbm %s2534_s10, %s1895_s17 }
  0x17   : > { %407 = vmatpush.msra.mxu0 %v384_v3  ;;  %427 = vmatpush.msra.mxu1 %v385_v4  ;;  %v1961_v9 = vld [vmem:[%s2527_s3 + $0x60] sm:$0xff]  ;;  %v1966_v10 = vld [vmem:[%s2527_s3 + $0x58] sm:$0xff]  ;;  %v381_v12 = vld [vmem:[%s2526_s2 + $0x48] sm:$0xff]  ;;  %s366_s30 = scalar_lea.vmem %s2524_s0, %s1605_s20  ;;  %s370_s28 = scalar_lea.vmem %s2525_s1, %s1605_s20  ;;  %vm1286_vm12 = vcmask 785408   ;;  %vm1348_vm15 = vcmask 130048  }
  0x18   : > { %489 = vmatpush.msra.mxu3 %v1950_v6  ;;  %469 = vmatpush.msra.mxu2 %v1961_v9  ;;  %v380_v11 = vld [vmem:[%s2526_s2 + $0x40] sm:$0xff]  ;;  %v1984_v13 = vld [vmem:[%s2527_s3 + $0x50] sm:$0xff]  ;;  %v1989_v14 = vld [vmem:[%s2527_s3 + $0x48] sm:$0xff]  ;;  %s2542_s20 = smov 64  }
  0x19   : > { %408 = vmatpush.msra.mxu0 %v382_v7  ;;  %428 = vmatpush.msra.mxu1 %v383_v8  ;;  %v1994_v15 = vld [vmem:[%s2527_s3 + $0x40] sm:$0xff]  ;;  %v378_v16 = vld [vmem:[%s2526_s2 + $0x30] sm:$0xff]  ;;  %v379_v17 = vld [vmem:[%s2526_s2 + $0x38] sm:$0xff] }
  0x1a   : > { %490 = vmatpush.msra.mxu3 %v1966_v10  ;;  %470 = vmatpush.msra.mxu2 %v1984_v13  ;;  %v2007_v18 = vld [vmem:[%s2527_s3 + $0x38] sm:$0xff]  ;;  %v2012_v19 = vld [vmem:[%s2527_s3 + $0x30] sm:$0xff]  ;;  %v376_v20 = vld [vmem:[%s2526_s2 + $0x20] sm:$0xff] }
  0x1b   : > { %409 = vmatpush.msra.mxu0 %v380_v11  ;;  %429 = vmatpush.msra.mxu1 %v381_v12  ;;  %v377_v21 = vld [vmem:[%s2526_s2 + $0x28] sm:$0xff]  ;;  %v2031_v23 = vld [vmem:[%s2527_s3 + $0x20] sm:$0xff]  ;;  %v374_v24 = vld [vmem:[%s2526_s2 + $0x10] sm:$0xff] }
  0x1c   : > { %491 = vmatpush.msra.mxu3 %v1989_v14  ;;  %471 = vmatpush.msra.mxu2 %v1994_v15  ;;  %v2026_v22 = vld [vmem:[%s2527_s3 + $0x28] sm:$0xff]  ;;  %v375_v25 = vld [vmem:[%s2526_s2 + $0x18] sm:$0xff]  ;;  %v2054_v27 = vld [vmem:[%s2527_s3 + $0x10] sm:$0xff] }
  0x1d   : > { %410 = vmatpush.msra.mxu0 %v378_v16  ;;  %430 = vmatpush.msra.mxu1 %v379_v17  ;;  %v2049_v26 = vld [vmem:[%s2527_s3 + $0x18] sm:$0xff]  ;;  %v372_v28 = vld [vmem:[%s2526_s2] sm:$0xff]  ;;  %v373_v29 = vld [vmem:[%s2526_s2 + $0x8] sm:$0xff] }
  0x1e   : > { %492 = vmatpush.msra.mxu3 %v2007_v18  ;;  %472 = vmatpush.msra.mxu2 %v2012_v19  ;;  %v371_v30 = vld [vmem:[%s366_s30] sm:$0xff]  ;;  %v2069_v31 = vld [vmem:[%s2527_s3 + $0x8] sm:$0xff]  ;;  %s1815_s30 = smov 96  }
  0x1f   : > { %411 = vmatpush.msra.mxu0 %v376_v20  ;;  %431 = vmatpush.msra.mxu1 %v377_v21  ;;  %v2074_v32 = vld [vmem:[%s2527_s3] sm:$0xff] }
  0x20   : > { %493 = vmatpush.msra.mxu3 %v2026_v22  ;;  %473 = vmatpush.msra.mxu2 %v2031_v23  ;;  %v388_v34 = vld [vmem:[%s2528_s4] sm:$0x3] }
  0x21   : > { %412 = vmatpush.msra.mxu0 %v374_v24  ;;  %432 = vmatpush.msra.mxu1 %v375_v25  ;;  %v390_v35 = vperm.slane %v388_v34, 0  ;;  %v391_v36 = vperm.slane %v388_v34, 1 }
  0x22   : > { %494 = vmatpush.msra.mxu3 %v2049_v26  ;;  %474 = vmatpush.msra.mxu2 %v2054_v27 }
  0x23   : > { %413 = vmatpush.msra.mxu0 %v372_v28  ;;  %433 = vmatpush.msra.mxu1 %v373_v29 }
  0x24   : > { %1607 = vmatmul.msk.f32.vlgmr.msra.gmra.mxu0 %vm394_vm0, %v371_v30  ;;  %1608 = vmatmul.msk.f32.vlgmr.msra.gmra.mxu1 %vm394_vm0, %v371_v30 }
  0x25   : > { %495 = vmatpush.msra.mxu3 %v2069_v31  ;;  %475 = vmatpush.msra.mxu2 %v2074_v32 }
  0x26   : > { %496 = vmatmul.f32.vlgmr.msra.gmra.mxu3 %v1810_v33  ;;  %476 = vmatmul.f32.vlgmr.msra.gmra.mxu2 %v1810_v33 }
  0x27   : > { %550 = vmatpush.msrb.mxu0 %v1943_v5  ;;  %570 = vmatpush.msrb.mxu1 %v1931_v2 }
  0x28   : > { %629 = vmatpush.msrb.mxu2 %v1943_v5  ;;  %649 = vmatpush.msrb.mxu3 %v1931_v2 }
  0x29   : > { %551 = vmatpush.msrb.mxu0 %v1961_v9  ;;  %571 = vmatpush.msrb.mxu1 %v1950_v6 }
  0x2a   : > { %630 = vmatpush.msrb.mxu2 %v1961_v9  ;;  %650 = vmatpush.msrb.mxu3 %v1950_v6 }
  0x2b   : > { %552 = vmatpush.msrb.mxu0 %v1984_v13  ;;  %572 = vmatpush.msrb.mxu1 %v1966_v10 }
  0x2c   : > { %631 = vmatpush.msrb.mxu2 %v1984_v13  ;;  %651 = vmatpush.msrb.mxu3 %v1966_v10 }
  0x2d   : > { %553 = vmatpush.msrb.mxu0 %v1994_v15  ;;  %573 = vmatpush.msrb.mxu1 %v1989_v14 }
  0x2e   : > { %632 = vmatpush.msrb.mxu2 %v1994_v15  ;;  %652 = vmatpush.msrb.mxu3 %v1989_v14 }
  0x2f   : > { %554 = vmatpush.msrb.mxu0 %v2012_v19  ;;  %574 = vmatpush.msrb.mxu1 %v2007_v18 }
  0x30   : > { %633 = vmatpush.msrb.mxu2 %v2012_v19  ;;  %653 = vmatpush.msrb.mxu3 %v2007_v18 }
  0x31   : > { %555 = vmatpush.msrb.mxu0 %v2031_v23  ;;  %575 = vmatpush.msrb.mxu1 %v2026_v22 }
  0x32   : > { %634 = vmatpush.msrb.mxu2 %v2031_v23  ;;  %654 = vmatpush.msrb.mxu3 %v2026_v22 }
  0x33   : > { %556 = vmatpush.msrb.mxu0 %v2054_v27  ;;  %576 = vmatpush.msrb.mxu1 %v2049_v26 }
  0x34   : > { %635 = vmatpush.msrb.mxu2 %v2054_v27  ;;  %655 = vmatpush.msrb.mxu3 %v2049_v26 }
  0x35   : > { %557 = vmatpush.msrb.mxu0 %v2074_v32  ;;  %577 = vmatpush.msrb.mxu1 %v2069_v31 }
  0x36   : > { %636 = vmatpush.msrb.mxu2 %v2074_v32  ;;  %656 = vmatpush.msrb.mxu3 %v2069_v31 }
  0x37   : > { %708 = vmatpush.msra.mxu0 %v1943_v5  ;;  %728 = vmatpush.msra.mxu1 %v1931_v2 }
  0x38   : > { %787 = vmatpush.msra.mxu2 %v1943_v5  ;;  %807 = vmatpush.msra.mxu3 %v1931_v2 }
  0x39   : > { %709 = vmatpush.msra.mxu0 %v1961_v9  ;;  %729 = vmatpush.msra.mxu1 %v1950_v6 }
  0x3a   : > { %788 = vmatpush.msra.mxu2 %v1961_v9  ;;  %808 = vmatpush.msra.mxu3 %v1950_v6 }
  0x3b   : > { %710 = vmatpush.msra.mxu0 %v1984_v13  ;;  %730 = vmatpush.msra.mxu1 %v1966_v10 }
  0x3c   : > { %789 = vmatpush.msra.mxu2 %v1984_v13  ;;  %809 = vmatpush.msra.mxu3 %v1966_v10 }
  0x3d   : > { %711 = vmatpush.msra.mxu0 %v1994_v15  ;;  %731 = vmatpush.msra.mxu1 %v1989_v14 }
  0x3e   : > { %790 = vmatpush.msra.mxu2 %v1994_v15  ;;  %810 = vmatpush.msra.mxu3 %v1989_v14 }
  0x3f   : > { %712 = vmatpush.msra.mxu0 %v2012_v19  ;;  %732 = vmatpush.msra.mxu1 %v2007_v18 }
  0x40   : > { %791 = vmatpush.msra.mxu2 %v2012_v19  ;;  %811 = vmatpush.msra.mxu3 %v2007_v18 }
  0x41   : > { %713 = vmatpush.msra.mxu0 %v2031_v23  ;;  %733 = vmatpush.msra.mxu1 %v2026_v22 }
  0x42   : > { %792 = vmatpush.msra.mxu2 %v2031_v23  ;;  %812 = vmatpush.msra.mxu3 %v2026_v22 }
  0x43   : > { %714 = vmatpush.msra.mxu0 %v2054_v27  ;;  %734 = vmatpush.msra.mxu1 %v2049_v26 }
  0x44   : > { %793 = vmatpush.msra.mxu2 %v2054_v27  ;;  %813 = vmatpush.msra.mxu3 %v2049_v26 }
  0x45   : > { %715 = vmatpush.msra.mxu0 %v2074_v32  ;;  %735 = vmatpush.msra.mxu1 %v2069_v31 }
  0x46   : > { %794 = vmatpush.msra.mxu2 %v2074_v32  ;;  %814 = vmatpush.msra.mxu3 %v2069_v31 }
  0xa1   : > { %v415_v37 = vpop.f32.mrf.mxu0  ;;  %v435_v38 = vpop.f32.mrf.mxu1 }
  0xa2   : > { %v416_v39 = vadd.f32 %v415_v37, %v390_v35  ;;  %v436_v40 = vadd.f32 %v435_v38, %v391_v36 }
  0xa4   : > { %438 = vst [vmem:[#allocation2] sm:$0xff] %v416_v39 }
  0xa5   : > { %439 = vst [vmem:[#allocation2 + $0x8] sm:$0xff] %v436_v40 }
  0xa9   : > { %v497_v41 = vpop.f32.mrf.mxu3  ;;  %v477_v42 = vpop.f32.mrf.mxu2 }
  0xaa   : > { %v502_v43 = vrot.slane %v497_v41, 7 }
  0xac   : > { %v456_v44 = vld [vmem:[#allocation2] ss:$8 sm:$0x3]  ;;  %v504_v45 = vsel %vm503_vm1, %v477_v42, %v502_v43  ;;  %v538_v1 = vld [vmem:[#allocation2 + $0x1] ss:$8 sm:$0x3] }
  0xad   : > { %v506_v46 = vadd.f32 %v504_v45, %v456_v44  ;;  %v617_v38 = vld [vmem:[#allocation2 + $0x2] ss:$8 sm:$0x3] }
  0xaf   : > { %v507_v47 = vmul.f32 0.5, %v506_v46  ;;  %1684 = vtanh.f32 %v506_v46 }
  0xb1   : > { %1686 = vtanh.f32 %v507_v47 }
  0xb5   : > { %v1685_v48 = vpop.eup %1684 }
  0xb6   : > { %v514_v52 = vrot.slane %v1685_v48, 1 }
  0xb7   : > { %v1687_v49 = vpop.eup %1686 }
  0xb8   : > { %v509_v50 = vadd.f32 1.0, %v1687_v49 }
  0xba   : > { %v510_v51 = vmul.f32 0.5, %v509_v50 }
  0xbc   : > { %v516_v53 = vmul.f32 %v514_v52, %v510_v51  ;;  %v512_v54 = vmul.f32 0.0, %v510_v51 }
  0xbe   : > { %518 = vrot.lane.b32.xlu0 %v516_v53, %s2536_s12 }
  0xc6   : > { %524 = vrot.lane.b32.xlu0 %v510_v51, %s2536_s12 }
 0x130   : > { %v519_v55 = vpop.permute.xlu0 %518 }
 0x131   : > { %v521_v56 = vadd.f32 %v519_v55, %v512_v54 }
 0x133   : > { %1688 = vtanh.f32 %v521_v56 }
 0x138   : > { %v525_v58 = vpop.permute.xlu0 %524 }
 0x139   : > { %v1689_v57 = vpop.eup %1688  ;;  %v526_v59 = vrot.slane %v525_v58, 1 }
 0x13a   : > { %529 = vrot.lane.b32.xlu1 %v1689_v57, %s2536_s12 }
 0x1ac   : > { %v530_v60 = vpop.permute.xlu1 %529 }
 0x1ad   : > { %v532_v61 = vmul.f32 %v530_v60, %v526_v59 }
 0x1af   : > { %1609 = vmatmul.msk.f32.vlgmr.msrb.gmra.mxu0 %vm394_vm0, %v532_v61  ;;  %1610 = vmatmul.msk.f32.vlgmr.msrb.gmra.mxu1 %vm394_vm0, %v532_v61  ;;  %534 = vst.msk [vmem:[#allocation3] sm:$0x1] %vm533_vm2, %v532_v61 }
 0x1b0   : > { %536 = vst.msk [vmem:[#allocation3 + $0x7] sm:$0x1] %vm535_vm3, %v532_v61  ;;  %866 = vmatpush.msrb.mxu0 %v1943_v5  ;;  %886 = vmatpush.msrb.mxu1 %v1931_v2 }
 0x1b2   : > { %867 = vmatpush.msrb.mxu0 %v1961_v9  ;;  %887 = vmatpush.msrb.mxu1 %v1950_v6 }
 0x1b4   : > { %868 = vmatpush.msrb.mxu0 %v1984_v13  ;;  %888 = vmatpush.msrb.mxu1 %v1966_v10 }
 0x1b6   : > { %869 = vmatpush.msrb.mxu0 %v1994_v15  ;;  %889 = vmatpush.msrb.mxu1 %v1989_v14 }
 0x1b8   : > { %870 = vmatpush.msrb.mxu0 %v2012_v19  ;;  %890 = vmatpush.msrb.mxu1 %v2007_v18 }
 0x1ba   : > { %871 = vmatpush.msrb.mxu0 %v2031_v23  ;;  %891 = vmatpush.msrb.mxu1 %v2026_v22 }
 0x1bc   : > { %872 = vmatpush.msrb.mxu0 %v2054_v27  ;;  %892 = vmatpush.msrb.mxu1 %v2049_v26 }
 0x1be   : > { %873 = vmatpush.msrb.mxu0 %v2074_v32  ;;  %893 = vmatpush.msrb.mxu1 %v2069_v31 }
 0x22c   : > { %v579_v62 = vpop.f32.mrf.mxu1  ;;  %v559_v0 = vpop.f32.mrf.mxu0 }
 0x22d   : > { %v584_v63 = vrot.slane %v579_v62, 7 }
 0x22f   : > { %v585_v3 = vsel %vm503_vm1, %v559_v0, %v584_v63  ;;  %v775_v0 = vld [vmem:[#allocation2 + $0x4] ss:$8 sm:$0x3] }
 0x230   : > { %v587_v4 = vadd.f32 %v585_v3, %v538_v1 }
 0x232   : > { %v588_v7 = vmul.f32 0.5, %v587_v4  ;;  %1690 = vtanh.f32 %v587_v4 }
 0x234   : > { %1692 = vtanh.f32 %v588_v7 }
 0x238   : > { %v1691_v8 = vpop.eup %1690 }
 0x239   : > { %v595_v17 = vrot.slane %v1691_v8, 1 }
 0x23a   : > { %v1693_v11 = vpop.eup %1692 }
 0x23b   : > { %v590_v12 = vadd.f32 1.0, %v1693_v11 }
 0x23d   : > { %v591_v16 = vmul.f32 0.5, %v590_v12 }
 0x23f   : > { %605 = vrot.lane.b32.xlu2 %v591_v16, %s2536_s12  ;;  %v597_v20 = vmul.f32 %v595_v17, %v591_v16  ;;  %v593_v21 = vmul.f32 %v591_v16, %v521_v56 }
 0x241   : > { %599 = vrot.lane.b32.xlu1 %v597_v20, %s2536_s12 }
 0x299   : > { %v606_v29 = vpop.permute.xlu2 %605 }
 0x29a   : > { %v607_v30 = vrot.slane %v606_v29, 1 }
 0x2b3   : > { %v600_v24 = vpop.permute.xlu1 %599 }
 0x2b4   : > { %v602_v25 = vadd.f32 %v600_v24, %v593_v21 }
 0x2b6   : > { %1694 = vtanh.f32 %v602_v25 }
 0x2bc   : > { %v1695_v28 = vpop.eup %1694 }
 0x2bd   : > { %610 = vrot.lane.b32.xlu2 %v1695_v28, %s2536_s12 }
 0x317   : > { %v611_v33 = vpop.permute.xlu2 %610 }
 0x318   : > { %v613_v34 = vmul.f32 %v611_v33, %v607_v30 }
 0x31a   : > { %614 = vst.msk [vmem:[#allocation3 + $0x1] sm:$0x1] %vm533_vm2, %v613_v34  ;;  %1611 = vmatmul.msk.f32.vlgmr.msrb.gmra.mxu2 %vm394_vm0, %v613_v34  ;;  %1612 = vmatmul.msk.f32.vlgmr.msrb.gmra.mxu3 %vm394_vm0, %v613_v34 }
 0x31b   : > { %615 = vst.msk [vmem:[#allocation3 + $0x6] sm:$0x1] %vm535_vm3, %v613_v34  ;;  %945 = vmatpush.msrb.mxu2 %v1943_v5  ;;  %965 = vmatpush.msrb.mxu3 %v1931_v2 }
 0x31d   : > { %946 = vmatpush.msrb.mxu2 %v1961_v9  ;;  %966 = vmatpush.msrb.mxu3 %v1950_v6 }
 0x31f   : > { %947 = vmatpush.msrb.mxu2 %v1984_v13  ;;  %967 = vmatpush.msrb.mxu3 %v1966_v10 }
 0x321   : > { %948 = vmatpush.msrb.mxu2 %v1994_v15  ;;  %968 = vmatpush.msrb.mxu3 %v1989_v14 }
 0x323   : > { %949 = vmatpush.msrb.mxu2 %v2012_v19  ;;  %969 = vmatpush.msrb.mxu3 %v2007_v18 }
 0x325   : > { %950 = vmatpush.msrb.mxu2 %v2031_v23  ;;  %970 = vmatpush.msrb.mxu3 %v2026_v22 }
 0x327   : > { %951 = vmatpush.msrb.mxu2 %v2054_v27  ;;  %971 = vmatpush.msrb.mxu3 %v2049_v26 }
 0x329   : > { %952 = vmatpush.msrb.mxu2 %v2074_v32  ;;  %972 = vmatpush.msrb.mxu3 %v2069_v31 }
 0x39d   : > { %v658_v35 = vpop.f32.mrf.mxu3  ;;  %v638_v37 = vpop.f32.mrf.mxu2 }
 0x39e   : > { %v663_v36 = vrot.slane %v658_v35, 7 }
 0x3a0   : > { %v664_v39 = vsel %vm503_vm1, %v638_v37, %v663_v36  ;;  %v854_v37 = vld [vmem:[#allocation2 + $0x5] ss:$8 sm:$0x3] }
 0x3a1   : > { %v666_v40 = vadd.f32 %v664_v39, %v617_v38 }
 0x3a3   : > { %v667_v41 = vmul.f32 0.5, %v666_v40  ;;  %1696 = vtanh.f32 %v666_v40 }
 0x3a5   : > { %1698 = vtanh.f32 %v667_v41 }
 0x3a9   : > { %v1697_v42 = vpop.eup %1696 }
 0x3aa   : > { %v674_v46 = vrot.slane %v1697_v42, 1 }
 0x3ab   : > { %v1699_v43 = vpop.eup %1698 }
 0x3ac   : > { %v669_v44 = vadd.f32 1.0, %v1699_v43 }
 0x3ae   : > { %v670_v45 = vmul.f32 0.5, %v669_v44 }
 0x3b0   : > { %684 = vrot.lane.b32.xlu1 %v670_v45, %s2536_s12  ;;  %v676_v47 = vmul.f32 %v674_v46, %v670_v45  ;;  %v672_v48 = vmul.f32 %v670_v45, %v602_v25 }
 0x3b2   : > { %678 = vrot.lane.b32.xlu0 %v676_v47, %s2536_s12 }
 0x422   : > { %v685_v52 = vpop.permute.xlu1 %684 }
 0x423   : > { %v686_v53 = vrot.slane %v685_v52, 1 }
 0x424   : > { %v679_v49 = vpop.permute.xlu0 %678 }
 0x425   : > { %v681_v50 = vadd.f32 %v679_v49, %v672_v48 }
 0x427   : > { %1700 = vtanh.f32 %v681_v50 }
 0x42d   : > { %v1701_v51 = vpop.eup %1700 }
 0x42e   : > { %689 = vrot.lane.b32.xlu2 %v1701_v51, %s2536_s12 }
 0x488   : > { %v690_v54 = vpop.permute.xlu2 %689 }
 0x489   : > { %v692_v55 = vmul.f32 %v690_v54, %v686_v53 }
 0x48b   : > { %693 = vst.msk [vmem:[#allocation3 + $0x2] sm:$0x1] %vm533_vm2, %v692_v55  ;;  %1613 = vmatmul.msk.f32.vlgmr.msra.gmra.mxu0 %vm394_vm0, %v692_v55  ;;  %1614 = vmatmul.msk.f32.vlgmr.msra.gmra.mxu1 %vm394_vm0, %v692_v55 }
 0x48c   : > { %694 = vst.msk [vmem:[#allocation3 + $0x5] sm:$0x1] %vm535_vm3, %v692_v55  ;;  %1024 = vmatpush.msra.mxu0 %v1943_v5  ;;  %1044 = vmatpush.msra.mxu1 %v1931_v2 }
 0x48e   : > { %1025 = vmatpush.msra.mxu0 %v1961_v9  ;;  %1045 = vmatpush.msra.mxu1 %v1950_v6  ;;  %v696_v9 = vld [vmem:[#allocation2 + $0x3] ss:$8 sm:$0x3] }
 0x490   : > { %1026 = vmatpush.msra.mxu0 %v1984_v13  ;;  %1046 = vmatpush.msra.mxu1 %v1966_v10 }
 0x492   : > { %1027 = vmatpush.msra.mxu0 %v1994_v15  ;;  %1047 = vmatpush.msra.mxu1 %v1989_v14 }
 0x494   : > { %1028 = vmatpush.msra.mxu0 %v2012_v19  ;;  %1048 = vmatpush.msra.mxu1 %v2007_v18 }
 0x496   : > { %1029 = vmatpush.msra.mxu0 %v2031_v23  ;;  %1049 = vmatpush.msra.mxu1 %v2026_v22 }
 0x498   : > { %1030 = vmatpush.msra.mxu0 %v2054_v27  ;;  %1050 = vmatpush.msra.mxu1 %v2049_v26 }
 0x49a   : > { %1031 = vmatpush.msra.mxu0 %v2074_v32  ;;  %1051 = vmatpush.msra.mxu1 %v2069_v31 }
 0x508   : > { %v737_v2 = vpop.f32.mrf.mxu1  ;;  %v717_v6 = vpop.f32.mrf.mxu0 }
 0x509   : > { %v742_v5 = vrot.slane %v737_v2, 7 }
 0x50b   : > { %v743_v10 = vsel %vm503_vm1, %v717_v6, %v742_v5  ;;  %v933_v6 = vld [vmem:[#allocation2 + $0x6] ss:$8 sm:$0x3] }
 0x50c   : > { %v745_v13 = vadd.f32 %v743_v10, %v696_v9 }
 0x50e   : > { %v746_v14 = vmul.f32 0.5, %v745_v13  ;;  %1702 = vtanh.f32 %v745_v13 }
 0x510   : > { %1704 = vtanh.f32 %v746_v14 }
 0x514   : > { %v1703_v15 = vpop.eup %1702 }
 0x515   : > { %v753_v23 = vrot.slane %v1703_v15, 1 }
 0x516   : > { %v1705_v18 = vpop.eup %1704 }
 0x517   : > { %v748_v19 = vadd.f32 1.0, %v1705_v18 }
 0x519   : > { %v749_v22 = vmul.f32 0.5, %v748_v19 }
 0x51b   : > { %763 = vrot.lane.b32.xlu1 %v749_v22, %s2536_s12  ;;  %v755_v26 = vmul.f32 %v753_v23, %v749_v22  ;;  %v751_v27 = vmul.f32 %v749_v22, %v681_v50 }
 0x51d   : > { %757 = vrot.lane.b32.xlu0 %v755_v26, %s2536_s12 }
 0x58d   : > { %v764_v57 = vpop.permute.xlu1 %763 }
 0x58e   : > { %v765_v58 = vrot.slane %v764_v57, 1 }
 0x58f   : > { %v758_v31 = vpop.permute.xlu0 %757 }
 0x590   : > { %v760_v32 = vadd.f32 %v758_v31, %v751_v27 }
 0x592   : > { %1706 = vtanh.f32 %v760_v32 }
 0x598   : > { %v1707_v56 = vpop.eup %1706 }
 0x599   : > { %768 = vrot.lane.b32.xlu2 %v1707_v56, %s2536_s12 }
 0x5f3   : > { %v769_v59 = vpop.permute.xlu2 %768 }
 0x5f4   : > { %v771_v60 = vmul.f32 %v769_v59, %v765_v58 }
 0x5f6   : > { %772 = vst.msk [vmem:[#allocation3 + $0x3] sm:$0x1] %vm533_vm2, %v771_v60  ;;  %1615 = vmatmul.msk.f32.vlgmr.msra.gmra.mxu2 %vm394_vm0, %v771_v60  ;;  %1616 = vmatmul.msk.f32.vlgmr.msra.gmra.mxu3 %vm394_vm0, %v771_v60 }
 0x5f7   : > { %773 = vst.msk [vmem:[#allocation3 + $0x4] sm:$0x1] %vm535_vm3, %v771_v60 }
 0x679   : > { %v816_v61 = vpop.f32.mrf.mxu3  ;;  %v796_v63 = vpop.f32.mrf.mxu2 }
 0x67a   : > { %v821_v62 = vrot.slane %v816_v61, 7 }
 0x67c   : > { %v822_v1 = vsel %vm503_vm1, %v796_v63, %v821_v62  ;;  %v1012_v63 = vld [vmem:[#allocation2 + $0x7] ss:$8 sm:$0x3] }
 0x67d   : > { %v824_v3 = vadd.f32 %v822_v1, %v775_v0 }
 0x67f   : > { %v825_v4 = vmul.f32 0.5, %v824_v3  ;;  %1708 = vtanh.f32 %v824_v3 }
 0x681   : > { %1710 = vtanh.f32 %v825_v4 }
 0x685   : > { %v1709_v7 = vpop.eup %1708 }
 0x686   : > { %v832_v16 = vrot.slane %v1709_v7, 1 }
 0x687   : > { %v1711_v8 = vpop.eup %1710 }
 0x688   : > { %v827_v11 = vadd.f32 1.0, %v1711_v8 }
 0x68a   : > { %v828_v12 = vmul.f32 0.5, %v827_v11 }
 0x68c   : > { %842 = vrot.lane.b32.xlu1 %v828_v12, %s2536_s12  ;;  %v834_v17 = vmul.f32 %v832_v16, %v828_v12  ;;  %v830_v20 = vmul.f32 %v828_v12, %v760_v32 }
 0x68e   : > { %836 = vrot.lane.b32.xlu0 %v834_v17, %s2536_s12 }
 0x6fe   : > { %v843_v28 = vpop.permute.xlu1 %842 }
 0x6ff   : > { %v844_v29 = vrot.slane %v843_v28, 1 }
 0x700   : > { %v837_v21 = vpop.permute.xlu0 %836 }
 0x701   : > { %v839_v24 = vadd.f32 %v837_v21, %v830_v20 }
 0x703   : > { %1712 = vtanh.f32 %v839_v24 }
 0x709   : > { %v1713_v25 = vpop.eup %1712 }
 0x70a   : > { %847 = vrot.lane.b32.xlu2 %v1713_v25, %s2536_s12 }
 0x764   : > { %v848_v30 = vpop.permute.xlu2 %847 }
 0x765   : > { %v850_v33 = vmul.f32 %v848_v30, %v844_v29 }
 0x767   : > { %851 = vst.msk [vmem:[#allocation3 + $0x4] sm:$0x1] %vm533_vm2, %v850_v33  ;;  %1617 = vmatmul.msk.f32.vlgmr.msrb.gmra.mxu0 %vm394_vm0, %v850_v33  ;;  %1618 = vmatmul.msk.f32.vlgmr.msrb.gmra.mxu1 %vm394_vm0, %v850_v33 }
 0x768   : > { %852 = vst.msk [vmem:[#allocation3 + $0x3] sm:$0x1] %vm535_vm3, %v850_v33 }
 0x7e4   : > { %v895_v34 = vpop.f32.mrf.mxu1  ;;  %v875_v36 = vpop.f32.mrf.mxu0 }
 0x7e5   : > { %v900_v35 = vrot.slane %v895_v34, 7 }
 0x7e7   : > { %v901_v38 = vsel %vm503_vm1, %v875_v36, %v900_v35 }
 0x7e8   : > { %v903_v39 = vadd.f32 %v901_v38, %v854_v37 }
 0x7ea   : > { %v904_v40 = vmul.f32 0.5, %v903_v39  ;;  %1714 = vtanh.f32 %v903_v39 }
 0x7ec   : > { %1716 = vtanh.f32 %v904_v40 }
 0x7f0   : > { %v1715_v41 = vpop.eup %1714 }
 0x7f1   : > { %v911_v45 = vrot.slane %v1715_v41, 1 }
 0x7f2   : > { %v1717_v42 = vpop.eup %1716 }
 0x7f3   : > { %v906_v43 = vadd.f32 1.0, %v1717_v42  ;;  %v1205_v42 = vld [vmem:[%s2530_s6 + $0x70] sm:$0xff] }
 0x7f5   : > { %v907_v44 = vmul.f32 0.5, %v906_v43  ;;  %v1206_v43 = vld [vmem:[%s2530_s6 + $0x78] sm:$0xff] }
 0x7f7   : > { %921 = vrot.lane.b32.xlu1 %v907_v44, %s2536_s12  ;;  %v913_v46 = vmul.f32 %v911_v45, %v907_v44  ;;  %v909_v47 = vmul.f32 %v907_v44, %v839_v24 }
 0x7f9   : > { %915 = vrot.lane.b32.xlu0 %v913_v46, %s2536_s12 }
 0x869   : > { %v922_v51 = vpop.permute.xlu1 %921 }
 0x86a   : > { %v923_v52 = vrot.slane %v922_v51, 1 }
 0x86b   : > { %v916_v48 = vpop.permute.xlu0 %915 }
 0x86c   : > { %v918_v49 = vadd.f32 %v916_v48, %v909_v47 }
 0x86e   : > { %1718 = vtanh.f32 %v918_v49 }
 0x874   : > { %v1719_v50 = vpop.eup %1718 }
 0x875   : > { %926 = vrot.lane.b32.xlu2 %v1719_v50, %s2536_s12 }
 0x8cf   : > { %v927_v53 = vpop.permute.xlu2 %926 }
 0x8d0   : > { %v929_v54 = vmul.f32 %v927_v53, %v923_v52 }
 0x8d2   : > { %930 = vst.msk [vmem:[#allocation3 + $0x5] sm:$0x1] %vm533_vm2, %v929_v54  ;;  %1619 = vmatmul.msk.f32.vlgmr.msrb.gmra.mxu2 %vm394_vm0, %v929_v54  ;;  %1620 = vmatmul.msk.f32.vlgmr.msrb.gmra.mxu3 %vm394_vm0, %v929_v54 }
 0x8d3   : > { %931 = vst.msk [vmem:[#allocation3 + $0x2] sm:$0x1] %vm535_vm3, %v929_v54 }
 0x955   : > { %v974_v55 = vpop.f32.mrf.mxu3  ;;  %v954_v5 = vpop.f32.mrf.mxu2 }
 0x956   : > { %v979_v2 = vrot.slane %v974_v55, 7 }
 0x958   : > { %v980_v9 = vsel %vm503_vm1, %v954_v5, %v979_v2  ;;  %v1203_v2 = vld [vmem:[%s2530_s6 + $0x60] sm:$0xff]  ;;  %v1204_v5 = vld [vmem:[%s2530_s6 + $0x68] sm:$0xff] }
 0x959   : > { %v982_v10 = vadd.f32 %v980_v9, %v933_v6  ;;  %v1201_v6 = vld [vmem:[%s2530_s6 + $0x50] sm:$0xff]  ;;  %v1202_v9 = vld [vmem:[%s2530_s6 + $0x58] sm:$0xff] }
 0x95b   : > { %v983_v13 = vmul.f32 0.5, %v982_v10  ;;  %1720 = vtanh.f32 %v982_v10  ;;  %v1199_v10 = vld [vmem:[%s2530_s6 + $0x40] sm:$0xff] }
 0x95d   : > { %1722 = vtanh.f32 %v983_v13  ;;  %v1200_v13 = vld [vmem:[%s2530_s6 + $0x48] sm:$0xff] }
 0x961   : > { %v1721_v14 = vpop.eup %1720 }
 0x962   : > { %v990_v22 = vrot.slane %v1721_v14, 1  ;;  %v1197_v14 = vld [vmem:[%s2530_s6 + $0x30] sm:$0xff] }
 0x963   : > { %v1723_v15 = vpop.eup %1722 }
 0x964   : > { %v985_v18 = vadd.f32 1.0, %v1723_v15  ;;  %v1198_v15 = vld [vmem:[%s2530_s6 + $0x38] sm:$0xff] }
 0x966   : > { %v986_v19 = vmul.f32 0.5, %v985_v18  ;;  %v1195_v18 = vld [vmem:[%s2530_s6 + $0x20] sm:$0xff] }
 0x968   : > { %1000 = vrot.lane.b32.xlu1 %v986_v19, %s2536_s12  ;;  %v992_v23 = vmul.f32 %v990_v22, %v986_v19  ;;  %v988_v26 = vmul.f32 %v986_v19, %v918_v49  ;;  %v1196_v19 = vld [vmem:[%s2530_s6 + $0x28] sm:$0xff]  ;;  %v1193_v22 = vld [vmem:[%s2530_s6 + $0x10] sm:$0xff] }
 0x96a   : > { %994 = vrot.lane.b32.xlu0 %v992_v23, %s2536_s12  ;;  %v1194_v23 = vld [vmem:[%s2530_s6 + $0x18] sm:$0xff] }
 0x9da   : > { %v1001_v56 = vpop.permute.xlu1 %1000 }
 0x9db   : > { %v1002_v57 = vrot.slane %v1001_v56, 1  ;;  %v1282_v56 = vld [vmem:[%s2529_s5 + $0x58] sm:$0xff] }
 0x9dc   : > { %v995_v27 = vpop.permute.xlu0 %994  ;;  %1294 = vmatpush.msrb.mxu0 %v1282_v56  ;;  %v1330_v56 = vld [vmem:[%s2531_s7 + $0x18] sm:$0xff] }
 0x9dd   : > { %v997_v31 = vadd.f32 %v995_v27, %v988_v26  ;;  %v1191_v26 = vld [vmem:[%s2530_s6] sm:$0xff]  ;;  %v1192_v27 = vld [vmem:[%s2530_s6 + $0x8] sm:$0xff] }
 0x9df   : > { %1724 = vtanh.f32 %v997_v31 }
 0x9e5   : > { %v1725_v32 = vpop.eup %1724 }
 0x9e6   : > { %1005 = vrot.lane.b32.xlu2 %v1725_v32, %s2536_s12  ;;  %v1172_v32 = vlaneseq }
 0xa40   : > { %v1006_v58 = vpop.permute.xlu2 %1005 }
 0xa41   : > { %v1008_v59 = vmul.f32 %v1006_v58, %v1002_v57  ;;  %v1281_v57 = vld [vmem:[%s2529_s5 + $0x50] sm:$0xff]  ;;  %v2325_v58 = vshrl.u32 %v1172_v32, 7  ;;  %v1331_v32 = vld [vmem:[%s2531_s7 + $0x20] sm:$0xff] }
 0xa42   : > { %1295 = vmatpush.msrb.mxu0 %v1281_v57  ;;  %v1329_v57 = vld [vmem:[%s2531_s7 + $0x10] sm:$0xff] }
 0xa43   : > { %1009 = vst.msk [vmem:[#allocation3 + $0x6] sm:$0x1] %vm533_vm2, %v1008_v59  ;;  %1621 = vmatmul.msk.f32.vlgmr.msra.gmra.mxu0 %vm394_vm0, %v1008_v59  ;;  %1622 = vmatmul.msk.f32.vlgmr.msra.gmra.mxu1 %vm394_vm0, %v1008_v59  ;;  %vm1177_vm9 = vcmp.lt.s32.totalorder %v2325_v58, 7  ;;  %vm1174_vm10 = vcmp.gt.s32.totalorder %v2325_v58, 0  ;;  %vm1250_vm13 = vcmp.eq.s32.totalorder %v2325_v58, 0  ;;  %vm1258_vm14 = vcmp.eq.s32.totalorder %v2325_v58, 7 }
 0xa44   : > { %1010 = vst.msk [vmem:[#allocation3 + $0x1] sm:$0x1] %vm535_vm3, %v1008_v59 }
 0xac0   : > { %v1053_v60 = vpop.f32.mrf.mxu1  ;;  %v1033_v62 = vpop.f32.mrf.mxu0 }
 0xac1   : > { %v1058_v61 = vrot.slane %v1053_v60, 7  ;;  %v1280_v60 = vld [vmem:[%s2529_s5 + $0x48] sm:$0xff] }
 0xac2   : > { %1296 = vmatpush.msrb.mxu0 %v1280_v60  ;;  %v1327_v60 = vld [vmem:[%s2531_s7] sm:$0xff] }
 0xac3   : > { %v1059_v0 = vsel %vm503_vm1, %v1033_v62, %v1058_v61  ;;  %v1279_v61 = vld [vmem:[%s2529_s5 + $0x40] sm:$0xff]  ;;  %vm1324_vm1 = vcmask 392192  }
 0xac4   : > { %v1061_v1 = vadd.f32 %v1059_v0, %v1012_v63  ;;  %v1278_v63 = vld [vmem:[%s2529_s5 + $0x38] sm:$0xff]  ;;  %1297 = vmatpush.msrb.mxu0 %v1279_v61  ;;  %v1277_v0 = vld [vmem:[%s2529_s5 + $0x30] sm:$0xff] }
 0xac6   : > { %v1062_v3 = vmul.f32 0.5, %v1061_v1  ;;  %1726 = vtanh.f32 %v1061_v1  ;;  %1298 = vmatpush.msrb.mxu0 %v1278_v63  ;;  %v1276_v1 = vld [vmem:[%s2529_s5 + $0x28] sm:$0xff] }
 0xac8   : > { %1728 = vtanh.f32 %v1062_v3  ;;  %1299 = vmatpush.msrb.mxu0 %v1277_v0 }
 0xaca   : > { %1300 = vmatpush.msrb.mxu0 %v1276_v1 }
 0xacc   : > { %v1727_v4 = vpop.eup %1726 }
 0xacd   : > { %v1069_v12 = vrot.slane %v1727_v4, 1 }
 0xace   : > { %v1729_v7 = vpop.eup %1728 }
 0xacf   : > { %v1064_v8 = vadd.f32 1.0, %v1729_v7 }
 0xad1   : > { %v1065_v11 = vmul.f32 0.5, %v1064_v8 }
 0xad3   : > { %1079 = vrot.lane.b32.xlu1 %v1065_v11, %s2536_s12  ;;  %v1071_v16 = vmul.f32 %v1069_v12, %v1065_v11  ;;  %v1067_v17 = vmul.f32 %v1065_v11, %v997_v31  ;;  %v2315_v31 = vld [vmem:[%s370_s28] sm:$0xff] }
 0xad4   : > { %v1178_v59 = vrot.slane %v2315_v31, 1 }
 0xad5   : > { %1073 = vrot.lane.b32.xlu0 %v1071_v16, %s2536_s12 }
 0xad6   : > { %v1179_v62 = vsel %vm1177_vm9, %v1178_v59, 0.0  ;;  %v1328_v59 = vld [vmem:[%s2531_s7 + $0x8] sm:$0xff] }
 0xb45   : > { %v1080_v25 = vpop.permute.xlu1 %1079 }
 0xb46   : > { %v1081_v28 = vrot.slane %v1080_v25, 1  ;;  %v1272_v25 = vld [vmem:[%s2529_s5 + $0x8] sm:$0xff] }
 0xb47   : > { %v1074_v20 = vpop.permute.xlu0 %1073 }
 0xb48   : > { %v1076_v21 = vadd.f32 %v1074_v20, %v1067_v17  ;;  %v1275_v20 = vld [vmem:[%s2529_s5 + $0x20] sm:$0xff] }
 0xb49   : > { %1301 = vmatpush.msrb.mxu0 %v1275_v20 }
 0xb4a   : > { %1730 = vtanh.f32 %v1076_v21  ;;  %v1274_v21 = vld [vmem:[%s2529_s5 + $0x18] sm:$0xff] }
 0xb4b   : > { %1302 = vmatpush.msrb.mxu0 %v1274_v21 }
 0xb50   : > { %v1731_v24 = vpop.eup %1730 }
 0xb51   : > { %1084 = vrot.lane.b32.xlu2 %v1731_v24, %s2536_s12  ;;  %v1273_v24 = vld [vmem:[%s2529_s5 + $0x10] sm:$0xff]  ;;  %s1522_s12 = scalar_lea.sflag [#allocation5], %s361_s21 }
 0xb52   : > { %1303 = vmatpush.msrb.mxu0 %v1273_v24 }
 0xb54   : > { %1304 = vmatpush.msrb.mxu0 %v1272_v25 }
 0xb59   : > { %1181 = vrot.lane.b32.xlu2 %v2315_v31, %s1812_s22 }
 0xb61   : > { %1185 = vrot.lane.b32.xlu2 %v1179_v62, %s2542_s20 }
 0xbab   : > { %v1085_v29 = vpop.permute.xlu2 %1084 }
 0xbac   : > { %v1087_v30 = vmul.f32 %v1085_v29, %v1081_v28  ;;  %v1271_v28 = vld [vmem:[%s2529_s5] sm:$0xff]  ;;  %v1175_v29 = vrot.slane %v2315_v31, 7 }
 0xbad   : > { %1305 = vmatpush.msrb.mxu0 %v1271_v28 }
 0xbae   : > { %1088 = vst.msk [vmem:[#allocation3 + $0x7] sm:$0x1] %vm533_vm2, %v1087_v30  ;;  %vm1391_vm2 = vcmask 15360  }
 0xbaf   : > { %1089 = vst.msk [vmem:[#allocation3] sm:$0x1] %vm535_vm3, %v1087_v30 }
 0xbb3   : > { %v1182_v30 = vpop.permute.xlu2 %1181 }
 0xbb6   : > { %v1090_v33 = vld [vmem:[#allocation3] sm:$0xff] }
 0xbb7   : > { %1623 = vmatpush.xpose.msk.msra.mxu2 %vm394_vm0, %v1090_v33  ;;  %1158 = vmatpush.msra.mxu3 %v1090_v33 }
 0xbb9   : > { %1238 = vmatpush.msrb.mxu3 %v1206_v43 }
 0xbba   : > { %1624 = vmatmul.msk.f32.vlgmr.msra.gmra.mxu2 %vm394_vm0, %v1090_v33  ;;  %v1176_v33 = vsel %vm1174_vm10, %v1175_v29, 0.0 }
 0xbbb   : > { %1218 = vmatpush.msrb.mxu2 %v1205_v42  ;;  %1239 = vmatpush.msrb.mxu3 %v1204_v5 }
 0xbbd   : > { %1219 = vmatpush.msrb.mxu2 %v1203_v2  ;;  %1240 = vmatpush.msrb.mxu3 %v1202_v9 }
 0xbbf   : > { %1220 = vmatpush.msrb.mxu2 %v1201_v6  ;;  %1241 = vmatpush.msrb.mxu3 %v1200_v13 }
 0xbc1   : > { %1221 = vmatpush.msrb.mxu2 %v1199_v10  ;;  %1242 = vmatpush.msrb.mxu3 %v1198_v15  ;;  %v1338_v15 = vld [vmem:[%s2531_s7 + $0x58] sm:$0xff] }
 0xbc3   : > { %1222 = vmatpush.msrb.mxu2 %v1197_v14  ;;  %1243 = vmatpush.msrb.mxu3 %v1196_v19  ;;  %v1336_v19 = vld [vmem:[%s2531_s7 + $0x48] sm:$0xff] }
 0xbc5   : > { %1223 = vmatpush.msrb.mxu2 %v1195_v18  ;;  %1244 = vmatpush.msrb.mxu3 %v1194_v23  ;;  %v1337_v18 = vld [vmem:[%s2531_s7 + $0x50] sm:$0xff]  ;;  %v1334_v23 = vld [vmem:[%s2531_s7 + $0x38] sm:$0xff] }
 0xbc7   : > { %1224 = vmatpush.msrb.mxu2 %v1193_v22  ;;  %1245 = vmatpush.msrb.mxu3 %v1192_v27  ;;  %v1335_v22 = vld [vmem:[%s2531_s7 + $0x40] sm:$0xff]  ;;  %v1332_v27 = vld [vmem:[%s2531_s7 + $0x28] sm:$0xff] }
 0xbc9   : > { %1225 = vmatpush.msrb.mxu2 %v1191_v26  ;;  %v1333_v26 = vld [vmem:[%s2531_s7 + $0x30] sm:$0xff] }
 0xc3d   : > { %v1111_v34 = vpop.f32.mrf.mxu2 }
 0xc3e   : > { %v1114_v35 = vmul.f32 0.125, %v1111_v34  ;;  %v1189_v34 = vsel %vm1188_vm11, %v1176_v33, %v1182_v30 }
 0xc40   : > { %v1116_v36 = vsel %vm1115_vm4, %v1114_v35, -inf }
 0xc41   : > { %1117 = vmax.xlane.f32.xlu0 %v1116_v36 }
 0xcb4   : > { %v1118_v37 = vpop.xlane.xlu0 %1117 }
 0xcb5   : > { %v1119_v38 = vsub.f32 %v1114_v35, %v1118_v37  ;;  %v1186_v35 = vpop.permute.xlu2 %1185 }
 0xcb6   : > { %v1190_v36 = vsel %vm394_vm0, %v1189_v34, %v1186_v35 }
 0xcb7   : > { %v1120_v39 = vmul.f32 1.442695, %v1119_v38  ;;  %1628 = vmatmul.msk.f32.vlgmr.msrb.gmra.mxu0 %vm1286_vm12, %v1190_v36 }
 0xcb9   : > { %1732 = vpow2.f32 %v1120_v39 }
 0xcbf   : > { %v1733_v40 = vpop.eup %1732 }
 0xcc0   : > { %v1122_v41 = vsel %vm1115_vm4, %v1733_v40, 0.0 }
 0xcc1   : > { %1123 = vadd.xlane.f32.xlu1 %v1122_v41 }
 0xd34   : > { %v1124_v44 = vpop.xlane.xlu1 %1123 }
 0xd35   : > { %1734 = vrcp.f32 %v1124_v44  ;;  %v1136_v48 = vand.u32 2147483648, %v1124_v44  ;;  %v1134_v50 = vand.u32 2147483647, %v1124_v44  ;;  %vm1130_vm6 = vweird.f32 %v1124_v44 }
 0xd37   : > { %v1137_v52 = vor.u32 1.1754944e-38, %v1136_v48  ;;  %vm1135_vm8 = vcmp.eq.f32.partialorder %v1134_v50, 8.507059e+37  ;;  %v1344_v48 = vld [vmem:[%s2531_s7 + $0x88] sm:$0xff] }
 0xd38   : > { %v1340_v50 = vld [vmem:[%s2531_s7 + $0x68] sm:$0xff]  ;;  %1385 = vmatpush.msra.mxu2 %v1344_v48 }
 0xd3b   : > { %v1735_v45 = vpop.eup %1734 }
 0xd3c   : > { %v1126_v46 = vmul.f32 %v1735_v45, %v1124_v44  ;;  %vm1131_vm5 = vweird.f32 %v1735_v45  ;;  %v2383_v44 = vld [vmem:[%s2533_s9] ss:$0 sm:$0xff] }
 0xd3d   : > { %vm1132_vm7 = vmor %vm1130_vm6, %vm1131_vm5  ;;  %1345 = vrot.lane.b32.xlu1 %v2383_v44, %s1813_s15 }
 0xd3e   : > { %v1127_v47 = vsub.f32 1.0, %v1126_v46  ;;  %v1342_v46 = vld [vmem:[%s2531_s7 + $0x78] sm:$0xff] }
 0xd3f   : > { %1351 = vmatpush.msrb.mxu1 %v1342_v46 }
 0xd40   : > { %v1128_v49 = vmul.f32 %v1735_v45, %v1127_v47  ;;  %v1341_v47 = vld [vmem:[%s2531_s7 + $0x70] sm:$0xff] }
 0xd41   : > { %1352 = vmatpush.msrb.mxu1 %v1341_v47 }
 0xd42   : > { %v1129_v51 = vadd.f32 %v1735_v45, %v1128_v49  ;;  %v1343_v49 = vld [vmem:[%s2531_s7 + $0x80] sm:$0xff] }
 0xd43   : > { %1386 = vmatpush.msra.mxu2 %v1343_v49  ;;  %1353 = vmatpush.msrb.mxu1 %v1340_v50 }
 0xd44   : > { %v1133_v53 = vsel %vm1132_vm7, %v1735_v45, %v1129_v51  ;;  %v1339_v51 = vld [vmem:[%s2531_s7 + $0x60] sm:$0xff]  ;;  %vm1430_vm7 = vcmask 7168  }
 0xd45   : > { %v1138_v54 = vsel %vm1135_vm8, %v1137_v52, %v1133_v53  ;;  %1354 = vmatpush.msrb.mxu1 %v1339_v51  ;;  %v1307_v53 = vpop.f32.mrf.mxu0 }
 0xd46   : > { %v1139_v55 = vmul.f32 %v1733_v40, %v1138_v54  ;;  %v1308_v5 = vadd.f32 %v2383_v44, %v1307_v53 }
 0xd47   : > { %1355 = vmatpush.msrb.mxu1 %v1338_v15 }
 0xd48   : > { %1625 = vmatmul.msk.f32.vlgmr.msra.gmra.mxu3 %vm1115_vm4, %v1139_v55 }
 0xd49   : > { %1356 = vmatpush.msrb.mxu1 %v1337_v18 }
 0xd4b   : > { %1357 = vmatpush.msrb.mxu1 %v1336_v19 }
 0xd4d   : > { %1358 = vmatpush.msrb.mxu1 %v1335_v22 }
 0xd4f   : > { %1359 = vmatpush.msrb.mxu1 %v1334_v23 }
 0xd51   : > { %1360 = vmatpush.msrb.mxu1 %v1333_v26 }
 0xd53   : > { %1361 = vmatpush.msrb.mxu1 %v1332_v27 }
 0xd55   : > { %1362 = vmatpush.msrb.mxu1 %v1331_v32 }
 0xd57   : > { %1363 = vmatpush.msrb.mxu1 %v1330_v56 }
 0xd59   : > { %1364 = vmatpush.msrb.mxu1 %v1329_v57 }
 0xd5b   : > { %1365 = vmatpush.msrb.mxu1 %v1328_v59 }
 0xd5d   : > { %1366 = vmatpush.msrb.mxu1 %v1327_v60 }
 0xdcb   : > { %v1160_v3 = vpop.f32.mrf.mxu3 }
 0xdcc   : > { %v1163_v4 = vsel %vm394_vm0, %v1160_v3, -inf }
 0xdcd   : > { %v1164_v7 = vrot.slane %v1163_v4, 4 }
 0xdcf   : > { %v1165_v8 = vmax.f32 %v1163_v4, %v1164_v7  ;;  %v1346_v4 = vpop.permute.xlu1 %1345 }
 0xdd1   : > { %v1166_v11 = vrot.slane %v1165_v8, 2 }
 0xdd3   : > { %v1167_v12 = vmax.f32 %v1165_v8, %v1166_v11 }
 0xdd5   : > { %v1168_v16 = vrot.slane %v1167_v12, 1 }
 0xdd7   : > { %v2348_v17 = vmax.f32 %v1167_v12, %v1168_v16 }
 0xdd9   : > { %1626 = vmatmul.msk.f32.vlgmr.msrb.gmra.mxu2 %vm394_vm0, %v2348_v17  ;;  %1627 = vmatmul.msk.f32.vlgmr.msrb.gmra.mxu3 %vm394_vm0, %v2348_v17 }
 0xe5c   : > { %v1227_v37 = vpop.f32.mrf.mxu2  ;;  %v1247_v41 = vpop.f32.mrf.mxu3 }
 0xe5d   : > { %v1251_v38 = vperm.slane %v1227_v37, 0  ;;  %v1259_v42 = vperm.slane %v1247_v41, 0 }
 0xe5f   : > { %v1252_v39 = vsel %vm1250_vm13, %v1251_v38, 0.0  ;;  %v1260_v40 = vsel %vm1258_vm14, %v1251_v38, 0.0  ;;  %v1261_v43 = vsel %vm1258_vm14, %v1259_v42, 0.0 }
 0xe60   : > { %1254 = vrot.lane.b32.xlu2 %v1252_v39, %s1813_s15  ;;  %s1534_s15 = sshll.u32 %s1530_s25, 4  ;;  %s1535_s15 = int_to_ptr.hbm [resolvable:$true] %s1534_s15 }
 0xe61   : > { %s1760_s28 = sshra.s32 %s1535_s15, 4  ;;  %s1761_s28 = int_to_ptr.hbm [resolvable:$true] %s1760_s28 }
 0xe62   : > { %p1767_p0 = scmp.lt.s32.totalorder %s1761_s28, %s2534_s10 }
 0xe68   : > { %1264 = vrot.lane.b32.xlu2 %v1260_v40, %s1812_s22 }
 0xe70   : > { %1266 = vrot.lane.b32.xlu2 %v1261_v43, %s1812_s22 }
 0xeba   : > { %v1255_v45 = vpop.permute.xlu2 %1254 }
 0xebb   : > { %v1257_v54 = vsub.f32 %v1251_v38, %v1255_v45 }
 0xec2   : > { %v1265_v52 = vpop.permute.xlu2 %1264 }
 0xeca   : > { %v1267_v55 = vpop.permute.xlu2 %1266 }
 0xecb   : > { %v1268_v2 = vsel %vm1188_vm11, %v1265_v52, %v1267_v55 }
 0xecc   : > { %v1270_v6 = vsub.f32 %v1257_v54, %v1268_v2 }
 0xece   : > { %v1310_v9 = vadd.f32 %v1308_v5, %v1270_v6 }
 0xed0   : > { %1736 = vtanh.f32 %v1310_v9 }
 0xed6   : > { %v1737_v10 = vpop.eup %1736 }
 0xed7   : > { %1317 = vrot.lane.b32.xlu0 %v1737_v10, %s1814_s29  ;;  %v1314_v13 = vrot.slane %v1737_v10, 1  ;;  %v1312_v62 = vrot.slane %v1737_v10, 7  ;;  %v1817_v10 = vmov 0   ;;  %s1762_s29 = scalar_lea.hbm %s1761_s28, 1 }
 0xed8   : > { %1681 = vset.pattern.permute.xlu2 %v1817_v10  ;;  %1682 = vset.pattern.permute.xlu0 %v1817_v10  ;;  %p1763_p11 = scmp.ne.s32.totalorder %s1761_s28, %s1762_s29 }
 0xed9   : > { %v1315_v14 = vsel %vm1177_vm9, %v1314_v13, 0.0  ;;  %v1313_v0 = vsel %vm1174_vm10, %v1312_v62, 0.0 }
 0xeda   : > { %1321 = vrot.lane.b32.xlu2 %v1315_v14, %s1815_s30  ;;  %s1818_s30 = smov 78   ;;  %p1764_p12 = pnand %p1763_p11, %p1912_p5 }
 0xedc   : > { %p1765_p13 = pneg %p1764_p12 }
 0xf34   : > { %v1322_v61 = vpop.permute.xlu2 %1321 }
 0xf35   : > { %1629 = vmatmul.msk.f32.vlgmr.msra.gmra.mxu2 %vm1348_vm15, %v1322_v61 }
 0xf49   : > { %v1318_v63 = vpop.permute.xlu0 %1317 }
 0xf4a   : > { %v1325_v1 = vsel %vm1324_vm1, %v1313_v0, %v1318_v63 }
 0xf4b   : > { %v1326_v3 = vsel %vm1286_vm12, %v1325_v1, %v1322_v61 }
 0xf4c   : > { %1367 = vmatmul.f32.vlgmr.msrb.gmra.mxu1 %v1326_v3 }
 0xfb8   : > { %v1388_v11 = vpop.f32.mrf.mxu2 }
 0xfc9   : > { %v1368_v7 = vpop.f32.mrf.mxu1 }
 0xfca   : > { %v1369_v8 = vadd.f32 %v1368_v7, %v1346_v4 }
 0xfcc   : > { %v1389_v12 = vadd.f32 %v1388_v11, %v1369_v8 }
 0xfce   : > { %v1392_v16 = vsel %vm1391_vm2, %v1389_v12, -inf }
 0xfcf   : > { %v1393_v20 = vrot.slane %v1392_v16, 4 }
 0xfd1   : > { %v1394_v21 = vmax.f32 %v1392_v16, %v1393_v20  ;;  %v1491_v16 = vld [vmem:[%s2532_s8 + $0x50] sm:$0xff]  ;;  %v1490_v20 = vld [vmem:[%s2532_s8 + $0x48] sm:$0xff] }
 0xfd3   : > { %v1395_v24 = vrot.slane %v1394_v21, 2 }
 0xfd5   : > { %v1396_v25 = vmax.f32 %v1394_v21, %v1395_v24  ;;  %v1489_v21 = vld [vmem:[%s2532_s8 + $0x40] sm:$0xff]  ;;  %v1488_v24 = vld [vmem:[%s2532_s8 + $0x38] sm:$0xff] }
 0xfd7   : > { %v1397_v28 = vrot.slane %v1396_v25, 1 }
 0xfd9   : > { %v1398_v29 = vmax.f32 %v1396_v25, %v1397_v28  ;;  %v1487_v25 = vld [vmem:[%s2532_s8 + $0x30] sm:$0xff]  ;;  %v1486_v28 = vld [vmem:[%s2532_s8 + $0x28] sm:$0xff] }
 0xfdb   : > { %v1399_v30 = vsub.f32 %v1389_v12, %v1398_v29  ;;  %v1492_v12 = vld [vmem:[%s2532_s8 + $0x58] sm:$0xff]  ;;  %v1485_v29 = vld [vmem:[%s2532_s8 + $0x20] sm:$0xff] }
 0xfdc   : > { %1503 = vmatpush.msra.mxu3 %v1492_v12 }
 0xfdd   : > { %v1400_v58 = vmul.f32 1.442695, %v1399_v30  ;;  %v1484_v30 = vld [vmem:[%s2532_s8 + $0x18] sm:$0xff] }
 0xfde   : > { %1504 = vmatpush.msra.mxu3 %v1491_v16 }
 0xfdf   : > { %1738 = vpow2.f32 %v1400_v58 }
 0xfe0   : > { %1505 = vmatpush.msra.mxu3 %v1490_v20 }
 0xfe2   : > { %1506 = vmatpush.msra.mxu3 %v1489_v21 }
 0xfe4   : > { %1507 = vmatpush.msra.mxu3 %v1488_v24 }
 0xfe5   : > { %v1739_v33 = vpop.eup %1738 }
 0xfe6   : > { %v1402_v34 = vsel %vm1391_vm2, %v1739_v33, 0.0  ;;  %1508 = vmatpush.msra.mxu3 %v1487_v25 }
 0xfe7   : > { %v1403_v35 = vrot.slane %v1402_v34, 4 }
 0xfe8   : > { %1509 = vmatpush.msra.mxu3 %v1486_v28 }
 0xfe9   : > { %v1404_v36 = vadd.f32 %v1403_v35, %v1402_v34  ;;  %v1482_v35 = vld [vmem:[%s2532_s8 + $0x8] sm:$0xff] }
 0xfea   : > { %1510 = vmatpush.msra.mxu3 %v1485_v29 }
 0xfeb   : > { %v1405_v37 = vrot.slane %v1404_v36, 2 }
 0xfec   : > { %1511 = vmatpush.msra.mxu3 %v1484_v30 }
 0xfed   : > { %v1406_v38 = vadd.f32 %v1405_v37, %v1404_v36 }
 0xfef   : > { %v1407_v39 = vrot.slane %v1406_v38, 1 }
 0xff1   : > { %v1408_v40 = vadd.f32 %v1407_v39, %v1406_v38 }
 0xff3   : > { %1740 = vrcp.f32 %v1408_v40  ;;  %v1420_v45 = vand.u32 2147483648, %v1408_v40  ;;  %v1418_v47 = vand.u32 2147483647, %v1408_v40  ;;  %vm1414_vm4 = vweird.f32 %v1408_v40 }
 0xff5   : > { %v1421_v49 = vor.u32 1.1754944e-38, %v1420_v45  ;;  %vm1419_vm6 = vcmp.eq.f32.partialorder %v1418_v47, 8.507059e+37 }
 0xff9   : > { %v1741_v41 = vpop.eup %1740 }
 0xffa   : > { %v1410_v42 = vmul.f32 %v1741_v41, %v1408_v40  ;;  %vm1415_vm3 = vweird.f32 %v1741_v41 }
 0xffb   : > { %vm1416_vm5 = vmor %vm1414_vm4, %vm1415_vm3 }
 0xffc   : > { %v1411_v43 = vsub.f32 1.0, %v1410_v42  ;;  %v1481_v42 = vld [vmem:[%s2532_s8] sm:$0xff] }
 0xffe   : > { %v1412_v46 = vmul.f32 %v1741_v41, %v1411_v43 }
0x1000   : > { %v1413_v48 = vadd.f32 %v1741_v41, %v1412_v46 }
0x1002   : > { %v1417_v50 = vsel %vm1416_vm5, %v1741_v41, %v1413_v48 }
0x1003   : > { %v1422_v51 = vsel %vm1419_vm6, %v1421_v49, %v1417_v50 }
0x1004   : > { %v1423_v52 = vmul.f32 %v1739_v33, %v1422_v51  ;;  %v1483_v33 = vld [vmem:[%s2532_s8 + $0x10] sm:$0xff] }
0x1005   : > { %1512 = vmatpush.msra.mxu3 %v1483_v33 }
0x1006   : > { %v1424_v53 = vmul.f32 0.5, %v1423_v52 }
0x1007   : > { %1513 = vmatpush.msra.mxu3 %v1482_v35 }
0x1008   : > { %1426 = vrot.lane.b32.xlu2 %v1424_v53, %s1816_s11  ;;  %s1766_s11 = scalar_lea.hbm %s2534_s10, 2 }
0x1009   : > { %1514 = vmatpush.msra.mxu3 %v1481_v42  ;;  %p1768_p1 = scmp.lt.s32.totalorder %s1766_s11, %s1762_s29 }
0x100b   : > { %p1769_p2 = por %p1768_p1, %p1767_p0 }
0x100d   : > { %p1770_p3 = pnand %p1769_p2, %p1765_p13 }
0x1062   : > { %v1427_v54 = vpop.permute.xlu2 %1426 }
0x1063   : > { %v1429_v55 = vadd.f32 %v1427_v54, %v1424_v53 }
0x1065   : > { %v1431_v2 = vsel %vm1430_vm7, %v1429_v55, -inf }
0x1066   : > { %v1432_v5 = vrot.slane %v1431_v2, 4 }
0x1068   : > { %v1433_v6 = vmax.f32 %v1431_v2, %v1432_v5 }
0x106a   : > { %v1434_v9 = vrot.slane %v1433_v6, 2 }
0x106c   : > { %v1435_v13 = vmax.f32 %v1433_v6, %v1434_v9 }
0x106e   : > { %v1436_v14 = vrot.slane %v1435_v13, 1 }
0x1070   : > { %v1437_v15 = vmax.f32 %v1435_v13, %v1436_v14 }
0x1072   : > { %v1438_v18 = vsub.f32 %v1429_v55, %v1437_v15 }
0x1074   : > { %v1439_v19 = vmul.f32 1.442695, %v1438_v18 }
0x1076   : > { %1742 = vpow2.f32 %v1439_v19 }
0x107c   : > { %v1743_v22 = vpop.eup %1742 }
0x107d   : > { %v1441_v23 = vsel %vm1430_vm7, %v1743_v22, 0.0 }
0x107e   : > { %v1442_v26 = vrot.slane %v1441_v23, 4 }
0x1080   : > { %v1443_v27 = vadd.f32 %v1442_v26, %v1441_v23 }
0x1082   : > { %v1444_v32 = vrot.slane %v1443_v27, 2 }
0x1084   : > { %v1445_v56 = vadd.f32 %v1444_v32, %v1443_v27 }
0x1086   : > { %v1446_v57 = vrot.slane %v1445_v56, 1 }
0x1088   : > { %v1447_v59 = vadd.f32 %v1446_v57, %v1445_v56 }
0x108a   : > { %1744 = vrcp.f32 %v1447_v59  ;;  %v1459_v63 = vand.u32 2147483648, %v1447_v59  ;;  %v1457_v1 = vand.u32 2147483647, %v1447_v59  ;;  %vm1453_vm9 = vweird.f32 %v1447_v59 }
0x108c   : > { %v1460_v4 = vor.u32 1.1754944e-38, %v1459_v63  ;;  %vm1458_vm13 = vcmp.eq.f32.partialorder %v1457_v1, 8.507059e+37 }
0x1090   : > { %v1745_v60 = vpop.eup %1744 }
0x1091   : > { %v1449_v61 = vmul.f32 %v1745_v60, %v1447_v59  ;;  %vm1454_vm8 = vweird.f32 %v1745_v60 }
0x1092   : > { %vm1455_vm10 = vmor %vm1453_vm9, %vm1454_vm8 }
0x1093   : > { %v1450_v62 = vsub.f32 1.0, %v1449_v61 }
0x1095   : > { %v1451_v0 = vmul.f32 %v1745_v60, %v1450_v62 }
0x1097   : > { %v1452_v3 = vadd.f32 %v1745_v60, %v1451_v0 }
0x1099   : > { %v1456_v7 = vsel %vm1455_vm10, %v1745_v60, %v1452_v3 }
0x109a   : > { %v1461_v8 = vsel %vm1458_vm13, %v1460_v4, %v1456_v7 }
0x109b   : > { %v1462_v11 = vmul.f32 %v1743_v22, %v1461_v8 }
0x109d   : > { %1465 = vperm.xlu2 %1681, %v1462_v11  }
0x10a5   : > { %1493 = vrot.lane.b32.xlu2 %v2383_v44, %s1818_s30 }
0x10f7   : > { %v1466_v58 = vpop.permute.xlu2 %1465 }
0x10f8   : > { %v1468_v34 = vmul.f32 %v1466_v58, %v2315_v31 }
0x10fa   : > { %v1469_v36 = vsel %vm1188_vm11, %v1468_v34, 0.0  ;;  %vm1519_vm11 = vcmask 24576  }
0x10fb   : > { %v1470_v37 = vrot.slane %v1469_v36, 4 }
0x10fd   : > { %v1471_v38 = vadd.f32 %v1470_v37, %v1469_v36 }
0x10ff   : > { %v1472_v39 = vrot.slane %v1471_v38, 2  ;;  %v1494_v44 = vpop.permute.xlu2 %1493 }
0x1101   : > { %v1473_v40 = vadd.f32 %v1472_v39, %v1471_v38 }
0x1103   : > { %v1474_v41 = vrot.slane %v1473_v40, 1 }
0x1105   : > { %v1475_v31 = vadd.f32 %v1474_v41, %v1473_v40 }
0x1107   : > { %1477 = vrot.lane.b32.xlu0 %v1475_v31, %s2542_s20  ;;  %s1532_s20 = sshll.u32 %s362_s27, 4  ;;  %s1533_s20 = int_to_ptr.vmem [resolvable:$true] %s1532_s20 }
0x1179   : > { %v1478_v43 = vpop.permute.xlu0 %1477 }
0x117a   : > { %v1480_v45 = vsel %vm394_vm0, %v2348_v17, %v1478_v43 }
0x117b   : > { %1630 = vmatmul.msk.f32.vlgmr.msra.gmra.mxu3 %vm1286_vm12, %v1480_v45 }
0x11fe   : > { %v1516_v46 = vpop.f32.mrf.mxu3 }
0x11ff   : > { %v1517_v47 = vadd.f32 %v1516_v46, %v1494_v44 }
0x1201   : > { %1520 = vst.msk [vmem:[%s362_s27] sm:$0x1] %vm1519_vm11, %v1517_v47 }
0x1202   : > { %1773 = shalt.err (!%p1770_p3)
}
0x1203   : > { %1633 = dma.vmem_to_hbm [thread:$0]  (%p1912_p5), %s1533_s20, 16, %s1535_s15, %s1522_s12  }
0x1204 PF: > { %p1639_p4 = scmp.ge.s32.totalorder %s1808_s16, 2  ;;  %s1546_s21 = sand.u32 1, %s1796_s13  }
0x1205   : > { %s1547_s22 = scalar_lea.sflag [#allocation5], %s1546_s21 }
0x1206   : > { %p1636_p7 = pnand %p1639_p4, %p1916_p6 }
0x1208   : > { %p1637_p8 = pneg %p1636_p7 }
0x120a   : > { %1791 = dma.done.wait (%p1637_p8), %s1547_s22, 16  }
0x120b   : > { %1793 = vsyncadd (%p1637_p8), %s1547_s22, 4294967280  ;;  %s2543_s25 = sld [smem:[#allocation7_spill]]  ;;  %p20_p9 = scmp.ge.s32.totalorder %s1899_s19, 4  }
0x120c   : > { %s2544_s15 = sld [smem:[#allocation8_spill]]  ;;  %s2545_s13 = smov %s1800_s14 }
0x120d   : > { %s2547_s16 = smov %s1899_s19  ;;  %22 = sbr.rel (!%p20_p9) target bundleno = 3 (0x3), region = 105 }
0x1211   : > { %s2546_s14 = smov %s2543_s25 }
0x1212   :  { %1552 = vsyncpa [#allocation5], 1 }
0x1213   :  { %1554 = vsyncpa [#allocation5 + $0x1], 1 }

</bundles_post_ra>
